<compile_context>
chip_gen: v7x
topology: tpu7x:2x2x1
jax: 0.10.0
libtpu: 0.0.40
codegen_flags: <defaults>
</compile_context>

<pallas_src>
import functools
import math

import jax
import jax.numpy as jnp
from jax.experimental import pallas as pl
from jax.experimental.pallas import tpu as pltpu

D_MODEL = 32
N_HEADS = 2
D_HEAD = D_MODEL // N_HEADS
D_FF = 64
N_LAYERS = 2
EPS = 1e-5            # torch.nn.LayerNorm default
NEG_INF = -1e9

# MXU operand dtype (accumulation is always f32).  Keep f32 for the tiny toy
# problem / tight tolerance; use jnp.bfloat16 on v6e/v7x at real sizes.
MXU_DTYPE = jnp.float32


def _mxu(a):
    """Cast for the MXU only when actually needed (no redundant VPU packs)."""
    return a if a.dtype == MXU_DTYPE else a.astype(MXU_DTYPE)


def _mm(a, b):
    """MXU matmul, f32 accumulation."""
    return jnp.dot(_mxu(a), _mxu(b), preferred_element_type=jnp.float32)


# --------------------------- fused decoder kernel ---------------------------

def _decoder_kernel(x_ref, mem_ref, mask_ref,
                    wd_ref, w2_ref, vec_ref, b64_ref, bqkv_ref, fgb_ref,
                    o_ref, *, B, S, SM, nlayers):
    D, H, Dh, F = D_MODEL, N_HEADS, D_HEAD, D_FF

    x = x_ref[...]          # (B*S, D)  f32
    mem = mem_ref[...]      # (B*SM, D) f32

    # ---- additive masks, generated in-kernel (no HBM mask traffic) ----
    rows = jax.lax.broadcasted_iota(jnp.int32, (1, S, S), 1)
    cols = jax.lax.broadcasted_iota(jnp.int32, (1, S, S), 2)
    causal_add = jnp.where(cols <= rows, 0.0, NEG_INF).astype(jnp.float32)      # (1,S,S)
    pad_add = jnp.where(mask_ref[...] > 0.5, 0.0, NEG_INF).astype(jnp.float32)  # (B,1,SM)

    def layer_norm(h, g, b):
        mu = jnp.mean(h, axis=-1, keepdims=True)
        hc = h - mu
        var = jnp.mean(hc * hc, axis=-1, keepdims=True)
        return hc * jax.lax.rsqrt(var + EPS) * g + b

    def attention(q2d, k2d, v2d, Sq, Skv, add_mask):
        # Softmax scale already folded into the Q projection.  Batch dim is a
        # dot_general batch dim; per-head outputs are kept as values and
        # concatenated along the lane axis (no scratch round-trip, no masked
        # per-head stores).
        q3 = q2d.reshape(B, Sq, D)
        k3 = k2d.reshape(B, Skv, D)
        v3 = v2d.reshape(B, Skv, D)
        head_outs = []
        for h in range(H):
            qh = q3[:, :, h * Dh:(h + 1) * Dh]          # (B, Sq, Dh)
            kh = k3[:, :, h * Dh:(h + 1) * Dh]          # (B, Skv, Dh)
            vh = v3[:, :, h * Dh:(h + 1) * Dh]          # (B, Skv, Dh)
            s = jnp.einsum('bqd,bkd->bqk', _mxu(qh), _mxu(kh),
                           preferred_element_type=jnp.float32) + add_mask
            m = jnp.max(s, axis=-1, keepdims=True)
            p = jnp.exp(s - m)
            denom = jnp.sum(p, axis=-1, keepdims=True)
            o = jnp.einsum('bqk,bkd->bqd', _mxu(p), _mxu(vh),
                           preferred_element_type=jnp.float32)
            head_outs.append(o * pl.reciprocal(denom, approx=True))
        return jnp.concatenate(head_outs, axis=-1).reshape(B * Sq, D)

    for l in range(nlayers):
        wd = wd_ref[l]        # (D, 10*D): [wq|wk|wv|wo]_self | [wq|wk|wv|wo]_src | w1
        vec = vec_ref[l]      # (10, D):   ln0g..ln2g, ln0b..ln2b, bo_s, bq_c, bo_c, b2
        b64 = b64_ref[l]      # (2, 2*D):  [bk_c|bv_c], b1
        bqkv = bqkv_ref[l]    # (1, 3*D)
        w2 = w2_ref[l]        # (F, D)

        wqkv = wd[:, 0:3 * D]
        wo_s = wd[:, 3 * D:4 * D]
        wq_c = wd[:, 4 * D:5 * D]
        wkv_c = wd[:, 5 * D:7 * D]
        wo_c = wd[:, 7 * D:8 * D]
        w1 = wd[:, 8 * D:8 * D + F]

        # ---- sublayer 0: masked self-attention (pre-norm, residual) ----
        h0 = layer_norm(x, vec[0:1, :], vec[3:4, :])
        qkv = _mm(h0, wqkv) + bqkv                                   # (B*S, 3D)
        ctx = attention(qkv[:, 0:D], qkv[:, D:2 * D], qkv[:, 2 * D:3 * D],
                        S, S, causal_add)
        x = x + _mm(ctx, wo_s) + vec[6:7, :]

        # ---- sublayer 1: cross-attention over encoder memory ----
        h1 = layer_norm(x, vec[1:2, :], vec[4:5, :])
        q = _mm(h1, wq_c) + vec[7:8, :]                              # (B*S, D)
        kv = _mm(mem, wkv_c) + b64[0:1, :]                           # (B*SM, 2D)
        ctx = attention(q, kv[:, 0:D], kv[:, D:2 * D], S, SM, pad_add)
        x = x + _mm(ctx, wo_c) + vec[8:9, :]

        # ---- sublayer 2: position-wise feed-forward ----
        h2 = layer_norm(x, vec[2:3, :], vec[5:6, :])
        f = jnp.maximum(_mm(h2, w1) + b64[1:2, :], 0.0)
        x = x + _mm(f, w2) + vec[9:10, :]

    # final LayerNorm + single store of the result tile
    fgb = fgb_ref[...]
    o_ref[...] = layer_norm(x, fgb[0:1, :], fgb[1:2, :]).astype(o_ref.dtype)


# ----------------------------- parameter packing -----------------------------

def pack_params(params):
    """One-time packing (hoisted out of the forward pass) of per-layer params
    into a few stacked, kernel-friendly tensors.  Folds the softmax 1/sqrt(Dh)
    scale into the Q projections."""
    scale = 1.0 / math.sqrt(D_HEAD)
    wd, w2, vec, b64, bqkv = [], [], [], [], []
    for p in params["layers"]:
        sa, ca = p["self_attn"], p["src_attn"]
        wd.append(jnp.concatenate(
            [sa["wq"] * scale, sa["wk"], sa["wv"], sa["wo"],
             ca["wq"] * scale, ca["wk"], ca["wv"], ca["wo"], p["w1"]], axis=1))
        w2.append(p["w2"])
        vec.append(jnp.stack(
            [p["ln0_g"], p["ln1_g"], p["ln2_g"],
             p["ln0_b"], p["ln1_b"], p["ln2_b"],
             sa["bo"], ca["bq"] * scale, ca["bo"], p["b2"]]))
        b64.append(jnp.stack([jnp.concatenate([ca["bk"], ca["bv"]]), p["b1"]]))
        bqkv.append(jnp.concatenate([sa["bq"] * scale, sa["bk"], sa["bv"]])[None, :])
    return dict(
        wd=jnp.stack(wd),       # (L, D, 10*D)
        w2=jnp.stack(w2),       # (L, F, D)
        vec=jnp.stack(vec),     # (L, 10, D)
        b64=jnp.stack(b64),     # (L, 2, 2*D)
        bqkv=jnp.stack(bqkv),   # (L, 1, 3*D)
        fgb=jnp.stack([params["norm_g"], params["norm_b"]]))  # (2, D)


def decoder_forward(x, memory, batch_mask, packed):
    """Fused Pallas decoder forward.  x: (B,S,D), memory: (B,SM,D),
    batch_mask: (B,SM) bool (True = valid memory position)."""
    B, S, D = x.shape
    SM = memory.shape[1]
    L = packed["wd"].shape[0]

    vmem = pl.BlockSpec(memory_space=pltpu.MemorySpace.VMEM)
    out2d = pl.pallas_call(
        functools.partial(_decoder_kernel, B=B, S=S, SM=SM, nlayers=L),
        out_shape=jax.ShapeDtypeStruct((B * S, D), x.dtype),
        in_specs=[vmem] * 9,
        out_specs=vmem,
    )(x.reshape(B * S, D),
      memory.reshape(B * SM, D),
      batch_mask.astype(jnp.float32).reshape(B, 1, SM),
      packed["wd"], packed["w2"], packed["vec"], packed["b64"],
      packed["bqkv"], packed["fgb"])
    return out2d.reshape(B, S, D)


# ----------------------------- pure-JAX reference ---------------------------

def _ref_ln(x, g, b):
    mu = jnp.mean(x, axis=-1, keepdims=True)
    var = jnp.mean((x - mu) ** 2, axis=-1, keepdims=True)
    return (x - mu) * jax.lax.rsqrt(var + EPS) * g + b


def _ref_mha(xq, xkv, p, add_mask):
    B, Sq, D = xq.shape
    Skv = xkv.shape[1]
    q = (xq @ p["wq"] + p["bq"]).reshape(B, Sq, N_HEADS, D_HEAD).transpose(0, 2, 1, 3)
    k = (xkv @ p["wk"] + p["bk"]).reshape(B, Skv, N_HEADS, D_HEAD).transpose(0, 2, 1, 3)
    v = (xkv @ p["wv"] + p["bv"]).reshape(B, Skv, N_HEADS, D_HEAD).transpose(0, 2, 1, 3)
    s = jnp.einsum("bhqd,bhkd->bhqk", q, k) / math.sqrt(D_HEAD) + add_mask[:, None]
    a = jax.nn.softmax(s, axis=-1)
    o = jnp.einsum("bhqk,bhkd->bhqd", a, v).transpose(0, 2, 1, 3).reshape(B, Sq, D)
    return o @ p["wo"] + p["bo"]


def decoder_reference(x, memory, batch_mask, params):
    B, S, D = x.shape
    Sm = memory.shape[1]
    causal = jnp.where(jnp.tril(jnp.ones((S, S), jnp.bool_)), 0.0, NEG_INF)
    causal_mask = jnp.broadcast_to(causal, (B, S, S)).astype(jnp.float32)
    pad_mask = jnp.broadcast_to(
        jnp.where(batch_mask[:, None, :], 0.0, NEG_INF), (B, S, Sm)).astype(jnp.float32)
    for p in params["layers"]:
        h = _ref_ln(x, p["ln0_g"], p["ln0_b"])
        x = x + _ref_mha(h, h, p["self_attn"], causal_mask)
        x = x + _ref_mha(_ref_ln(x, p["ln1_g"], p["ln1_b"]), memory,
                         p["src_attn"], pad_mask)
        h = _ref_ln(x, p["ln2_g"], p["ln2_b"])
        x = x + (jnp.maximum(h @ p["w1"] + p["b1"], 0.0) @ p["w2"] + p["b2"])
    return _ref_ln(x, params["norm_g"], params["norm_b"])


# --------------------------------- init -------------------------------------

def init_params(key):
    def dense(k, din, dout):
        kw, kb = jax.random.split(k)
        lim = 1.0 / math.sqrt(din)
        return (jax.random.uniform(kw, (din, dout), jnp.float32, -lim, lim),
                jax.random.uniform(kb, (dout,), jnp.float32, -lim, lim))

    def attn_params(k):
        ks = jax.random.split(k, 4)
        wq, bq = dense(ks[0], D_MODEL, D_MODEL)
        wk, bk = dense(ks[1], D_MODEL, D_MODEL)
        wv, bv = dense(ks[2], D_MODEL, D_MODEL)
        wo, bo = dense(ks[3], D_MODEL, D_MODEL)
        return dict(wq=wq, bq=bq, wk=wk, bk=bk, wv=wv, bv=bv, wo=wo, bo=bo)

    layers = []
    for i in range(N_LAYERS):
        k = jax.random.fold_in(key, i)
        ks = jax.random.split(k, 4)
        w1, b1 = dense(ks[2], D_MODEL, D_FF)
        w2, b2 = dense(ks[3], D_FF, D_MODEL)
        layers.append(dict(
            self_attn=attn_params(ks[0]),
            src_attn=attn_params(ks[1]),
            w1=w1, b1=b1, w2=w2, b2=b2,
            ln0_g=jnp.ones((D_MODEL,)), ln0_b=jnp.zeros((D_MODEL,)),
            ln1_g=jnp.ones((D_MODEL,)), ln1_b=jnp.zeros((D_MODEL,)),
            ln2_g=jnp.ones((D_MODEL,)), ln2_b=jnp.zeros((D_MODEL,)),
        ))
    return dict(layers=layers,
                norm_g=jnp.ones((D_MODEL,)), norm_b=jnp.zeros((D_MODEL,)))


if __name__ == "__main__":
    B, S, SM = 2, 8, 8
    key = jax.random.PRNGKey(0)
    kx, km, kp = jax.random.split(key, 3)
    x = jax.random.normal(kx, (B, S, D_MODEL), jnp.float32)
    memory = jax.random.normal(km, (B, SM, D_MODEL), jnp.float32)
    # key padding mask over memory: last 2 positions of second batch element padded
    batch_mask = jnp.array([[True] * SM,
                            [True] * (SM - 2) + [False] * 2])
    params = init_params(kp)
    packed = pack_params(params)   # one-time packing, hoisted out of forward

    out = decoder_forward(x, memory, batch_mask, packed)
    out = jax.block_until_ready(out)

    ref = decoder_reference(x, memory, batch_mask, params)
    assert out.shape == (B, S, D_MODEL)
    # tolerance loosened slightly for the approximate (EUP) softmax reciprocal
    assert jnp.allclose(out, ref, atol=2e-3, rtol=2e-3), "mismatch vs reference"
    print("KERNEL_OK")
</pallas_src>

<mosaic_0001>
module attributes {stable_mosaic.version = 11 : i64} {
  func.func @_decoder_kernel(%arg0: memref<16x32xf32, #tpu.memory_space<vmem>>, %arg1: memref<16x32xf32, #tpu.memory_space<vmem>>, %arg2: memref<2x1x8xf32, #tpu.memory_space<vmem>>, %arg3: memref<2x32x320xf32, #tpu.memory_space<vmem>>, %arg4: memref<2x64x32xf32, #tpu.memory_space<vmem>>, %arg5: memref<2x10x32xf32, #tpu.memory_space<vmem>>, %arg6: memref<2x2x64xf32, #tpu.memory_space<vmem>>, %arg7: memref<2x1x96xf32, #tpu.memory_space<vmem>>, %arg8: memref<2x32xf32, #tpu.memory_space<vmem>>, %arg9: memref<16x32xf32, #tpu.memory_space<vmem>>) attributes {dimension_semantics = [], scalar_prefetch = 0 : i64, scratch_operands = 0 : i64, tpu.core_type = #tpu.core_type<tc>} {
    %c0 = arith.constant 0 : index
    %c0_0 = arith.constant 0 : index
    %0 = vector.load %arg0[%c0, %c0_0] : memref<16x32xf32, #tpu.memory_space<vmem>>, vector<16x32xf32>
    %c0_1 = arith.constant 0 : index
    %c0_2 = arith.constant 0 : index
    %1 = vector.load %arg1[%c0_1, %c0_2] : memref<16x32xf32, #tpu.memory_space<vmem>>, vector<16x32xf32>
    %2 = tpu.iota {dimensions = array<i32: 1>} : vector<1x8x8xi32>
    %3 = tpu.iota {dimensions = array<i32: 2>} : vector<1x8x8xi32>
    %4 = arith.cmpi sle, %3, %2 : vector<1x8x8xi32>
    %cst = arith.constant 0.000000e+00 : f32
    %cst_3 = arith.constant -1.000000e+09 : f32
    %5 = vector.broadcast %cst : f32 to vector<1x8x8xf32>
    %6 = vector.broadcast %cst_3 : f32 to vector<1x8x8xf32>
    %7 = arith.select %4, %5, %6 : vector<1x8x8xi1>, vector<1x8x8xf32>
    %c0_4 = arith.constant 0 : index
    %c0_5 = arith.constant 0 : index
    %c0_6 = arith.constant 0 : index
    %8 = vector.load %arg2[%c0_4, %c0_5, %c0_6] : memref<2x1x8xf32, #tpu.memory_space<vmem>>, vector<2x1x8xf32>
    %cst_7 = arith.constant 5.000000e-01 : f32
    %9 = vector.broadcast %cst_7 : f32 to vector<2x1x8xf32>
    %10 = arith.cmpf ogt, %8, %9 : vector<2x1x8xf32>
    %cst_8 = arith.constant 0.000000e+00 : f32
    %cst_9 = arith.constant -1.000000e+09 : f32
    %11 = vector.broadcast %cst_8 : f32 to vector<2x1x8xf32>
    %12 = vector.broadcast %cst_9 : f32 to vector<2x1x8xf32>
    %13 = arith.select %10, %11, %12 : vector<2x1x8xi1>, vector<2x1x8xf32>
    %c0_10 = arith.constant 0 : index
    %c0_11 = arith.constant 0 : index
    %c0_12 = arith.constant 0 : index
    %14 = vector.load %arg3[%c0_10, %c0_11, %c0_12] : memref<2x32x320xf32, #tpu.memory_space<vmem>>, vector<1x32x320xf32>
    %15 = vector.shape_cast %14 : vector<1x32x320xf32> to vector<32x320xf32>
    %c0_13 = arith.constant 0 : index
    %c0_14 = arith.constant 0 : index
    %c0_15 = arith.constant 0 : index
    %16 = vector.load %arg5[%c0_13, %c0_14, %c0_15] : memref<2x10x32xf32, #tpu.memory_space<vmem>>, vector<1x10x32xf32>
    %17 = vector.shape_cast %16 : vector<1x10x32xf32> to vector<10x32xf32>
    %c0_16 = arith.constant 0 : index
    %c0_17 = arith.constant 0 : index
    %c0_18 = arith.constant 0 : index
    %18 = vector.load %arg6[%c0_16, %c0_17, %c0_18] : memref<2x2x64xf32, #tpu.memory_space<vmem>>, vector<1x2x64xf32>
    %19 = vector.shape_cast %18 : vector<1x2x64xf32> to vector<2x64xf32>
    %c0_19 = arith.constant 0 : index
    %c0_20 = arith.constant 0 : index
    %c0_21 = arith.constant 0 : index
    %20 = vector.load %arg7[%c0_19, %c0_20, %c0_21] : memref<2x1x96xf32, #tpu.memory_space<vmem>>, vector<1x1x96xf32>
    %21 = vector.shape_cast %20 : vector<1x1x96xf32> to vector<1x96xf32>
    %c0_22 = arith.constant 0 : index
    %c0_23 = arith.constant 0 : index
    %c0_24 = arith.constant 0 : index
    %22 = vector.load %arg4[%c0_22, %c0_23, %c0_24] : memref<2x64x32xf32, #tpu.memory_space<vmem>>, vector<1x64x32xf32>
    %23 = vector.shape_cast %22 : vector<1x64x32xf32> to vector<64x32xf32>
    %24 = vector.extract_strided_slice %15 {offsets = [0, 0], sizes = [32, 96], strides = [1, 1]} : vector<32x320xf32> to vector<32x96xf32>
    %25 = vector.extract_strided_slice %15 {offsets = [0, 96], sizes = [32, 32], strides = [1, 1]} : vector<32x320xf32> to vector<32x32xf32>
    %26 = vector.extract_strided_slice %15 {offsets = [0, 128], sizes = [32, 32], strides = [1, 1]} : vector<32x320xf32> to vector<32x32xf32>
    %27 = vector.extract_strided_slice %15 {offsets = [0, 160], sizes = [32, 64], strides = [1, 1]} : vector<32x320xf32> to vector<32x64xf32>
    %28 = vector.extract_strided_slice %15 {offsets = [0, 224], sizes = [32, 32], strides = [1, 1]} : vector<32x320xf32> to vector<32x32xf32>
    %29 = vector.extract_strided_slice %15 {offsets = [0, 256], sizes = [32, 64], strides = [1, 1]} : vector<32x320xf32> to vector<32x64xf32>
    %30 = vector.extract_strided_slice %17 {offsets = [0, 0], sizes = [1, 32], strides = [1, 1]} : vector<10x32xf32> to vector<1x32xf32>
    %31 = vector.extract_strided_slice %17 {offsets = [3, 0], sizes = [1, 32], strides = [1, 1]} : vector<10x32xf32> to vector<1x32xf32>
    %cst_25 = arith.constant dense<0.000000e+00> : vector<16xf32>
    %32 = vector.multi_reduction <add>, %0, %cst_25 [1] : vector<16x32xf32> to vector<16xf32>
    %33 = vector.shape_cast %32 : vector<16xf32> to vector<16x1xf32>
    %cst_26 = arith.constant 3.200000e+01 : f32
    %34 = vector.broadcast %cst_26 : f32 to vector<16x1xf32>
    %35 = arith.divf %33, %34 : vector<16x1xf32>
    %36 = vector.broadcast %35 : vector<16x1xf32> to vector<16x32xf32>
    %37 = arith.subf %0, %36 : vector<16x32xf32>
    %38 = arith.mulf %37, %37 : vector<16x32xf32>
    %cst_27 = arith.constant dense<0.000000e+00> : vector<16xf32>
    %39 = vector.multi_reduction <add>, %38, %cst_27 [1] : vector<16x32xf32> to vector<16xf32>
    %40 = vector.shape_cast %39 : vector<16xf32> to vector<16x1xf32>
    %cst_28 = arith.constant 3.200000e+01 : f32
    %41 = vector.broadcast %cst_28 : f32 to vector<16x1xf32>
    %42 = arith.divf %40, %41 : vector<16x1xf32>
    %cst_29 = arith.constant 9.99999974E-6 : f32
    %43 = vector.broadcast %cst_29 : f32 to vector<16x1xf32>
    %44 = arith.addf %42, %43 : vector<16x1xf32>
    %45 = math.rsqrt %44 : vector<16x1xf32>
    %46 = vector.broadcast %45 : vector<16x1xf32> to vector<16x32xf32>
    %47 = arith.mulf %37, %46 : vector<16x32xf32>
    %48 = vector.broadcast %30 : vector<1x32xf32> to vector<16x32xf32>
    %49 = arith.mulf %47, %48 : vector<16x32xf32>
    %50 = vector.broadcast %31 : vector<1x32xf32> to vector<16x32xf32>
    %51 = arith.addf %49, %50 : vector<16x32xf32>
    %cst_30 = arith.constant dense<0.000000e+00> : vector<16x96xf32>
    %52 = tpu.matmul %51, %24, %cst_30 {dimension_numbers = #tpu.dot_dimension_numbers<[1], [0], [0], [1], [0, 0, 1, 1], [], []>} : vector<16x32xf32>, vector<32x96xf32>, vector<16x96xf32> -> vector<16x96xf32>
    %53 = vector.broadcast %21 : vector<1x96xf32> to vector<16x96xf32>
    %54 = arith.addf %52, %53 : vector<16x96xf32>
    %55 = vector.extract_strided_slice %54 {offsets = [0, 0], sizes = [16, 32], strides = [1, 1]} : vector<16x96xf32> to vector<16x32xf32>
    %56 = vector.extract_strided_slice %54 {offsets = [0, 32], sizes = [16, 32], strides = [1, 1]} : vector<16x96xf32> to vector<16x32xf32>
    %57 = vector.extract_strided_slice %54 {offsets = [0, 64], sizes = [16, 32], strides = [1, 1]} : vector<16x96xf32> to vector<16x32xf32>
    %58 = vector.shape_cast %55 : vector<16x32xf32> to vector<2x8x32xf32>
    %59 = vector.shape_cast %56 : vector<16x32xf32> to vector<2x8x32xf32>
    %60 = vector.shape_cast %57 : vector<16x32xf32> to vector<2x8x32xf32>
    %61 = vector.extract_strided_slice %58 {offsets = [0, 0, 0], sizes = [2, 8, 16], strides = [1, 1, 1]} : vector<2x8x32xf32> to vector<2x8x16xf32>
    %62 = vector.extract_strided_slice %59 {offsets = [0, 0, 0], sizes = [2, 8, 16], strides = [1, 1, 1]} : vector<2x8x32xf32> to vector<2x8x16xf32>
    %63 = vector.extract_strided_slice %60 {offsets = [0, 0, 0], sizes = [2, 8, 16], strides = [1, 1, 1]} : vector<2x8x32xf32> to vector<2x8x16xf32>
    "tpu.trace_start"() <{level = 10 : i32, message = "bqd,bkd->bqk"}> : () -> ()
    %cst_31 = arith.constant dense<0.000000e+00> : vector<2x8x8xf32>
    %64 = tpu.matmul %61, %62, %cst_31 {dimension_numbers = #tpu.dot_dimension_numbers<[2], [2], [1], [1], [0, 0, 0, 1, 1, 1], [0], [0]>} : vector<2x8x16xf32>, vector<2x8x16xf32>, vector<2x8x8xf32> -> vector<2x8x8xf32>
    "tpu.trace_stop"() : () -> ()
    %65 = vector.broadcast %7 : vector<1x8x8xf32> to vector<2x8x8xf32>
    %66 = arith.addf %64, %65 : vector<2x8x8xf32>
    %cst_32 = arith.constant dense<0xFF800000> : vector<2x8xf32>
    %67 = vector.multi_reduction <maximumf>, %66, %cst_32 [2] : vector<2x8x8xf32> to vector<2x8xf32>
    %68 = vector.shape_cast %67 : vector<2x8xf32> to vector<2x8x1xf32>
    %69 = vector.broadcast %68 : vector<2x8x1xf32> to vector<2x8x8xf32>
    %70 = arith.subf %66, %69 : vector<2x8x8xf32>
    %71 = math.exp %70 : vector<2x8x8xf32>
    %cst_33 = arith.constant dense<0.000000e+00> : vector<2x8xf32>
    %72 = vector.multi_reduction <add>, %71, %cst_33 [2] : vector<2x8x8xf32> to vector<2x8xf32>
    %73 = vector.shape_cast %72 : vector<2x8xf32> to vector<2x8x1xf32>
    "tpu.trace_start"() <{level = 10 : i32, message = "bqk,bkd->bqd"}> : () -> ()
    %cst_34 = arith.constant dense<0.000000e+00> : vector<2x8x16xf32>
    %74 = tpu.matmul %71, %63, %cst_34 {dimension_numbers = #tpu.dot_dimension_numbers<[2], [1], [1], [2], [0, 0, 0, 1, 1, 2], [0], [0]>} : vector<2x8x8xf32>, vector<2x8x16xf32>, vector<2x8x16xf32> -> vector<2x8x16xf32>
    "tpu.trace_stop"() : () -> ()
    %75 = tpu.reciprocal %73 {approx = true} : vector<2x8x1xf32> -> vector<2x8x1xf32>
    %76 = vector.broadcast %75 : vector<2x8x1xf32> to vector<2x8x16xf32>
    %77 = arith.mulf %74, %76 : vector<2x8x16xf32>
    %78 = vector.extract_strided_slice %58 {offsets = [0, 0, 16], sizes = [2, 8, 16], strides = [1, 1, 1]} : vector<2x8x32xf32> to vector<2x8x16xf32>
    %79 = vector.extract_strided_slice %59 {offsets = [0, 0, 16], sizes = [2, 8, 16], strides = [1, 1, 1]} : vector<2x8x32xf32> to vector<2x8x16xf32>
    %80 = vector.extract_strided_slice %60 {offsets = [0, 0, 16], sizes = [2, 8, 16], strides = [1, 1, 1]} : vector<2x8x32xf32> to vector<2x8x16xf32>
    "tpu.trace_start"() <{level = 10 : i32, message = "bqd,bkd->bqk"}> : () -> ()
    %cst_35 = arith.constant dense<0.000000e+00> : vector<2x8x8xf32>
    %81 = tpu.matmul %78, %79, %cst_35 {dimension_numbers = #tpu.dot_dimension_numbers<[2], [2], [1], [1], [0, 0, 0, 1, 1, 1], [0], [0]>} : vector<2x8x16xf32>, vector<2x8x16xf32>, vector<2x8x8xf32> -> vector<2x8x8xf32>
    "tpu.trace_stop"() : () -> ()
    %82 = vector.broadcast %7 : vector<1x8x8xf32> to vector<2x8x8xf32>
    %83 = arith.addf %81, %82 : vector<2x8x8xf32>
    %cst_36 = arith.constant dense<0xFF800000> : vector<2x8xf32>
    %84 = vector.multi_reduction <maximumf>, %83, %cst_36 [2] : vector<2x8x8xf32> to vector<2x8xf32>
    %85 = vector.shape_cast %84 : vector<2x8xf32> to vector<2x8x1xf32>
    %86 = vector.broadcast %85 : vector<2x8x1xf32> to vector<2x8x8xf32>
    %87 = arith.subf %83, %86 : vector<2x8x8xf32>
    %88 = math.exp %87 : vector<2x8x8xf32>
    %cst_37 = arith.constant dense<0.000000e+00> : vector<2x8xf32>
    %89 = vector.multi_reduction <add>, %88, %cst_37 [2] : vector<2x8x8xf32> to vector<2x8xf32>
    %90 = vector.shape_cast %89 : vector<2x8xf32> to vector<2x8x1xf32>
    "tpu.trace_start"() <{level = 10 : i32, message = "bqk,bkd->bqd"}> : () -> ()
    %cst_38 = arith.constant dense<0.000000e+00> : vector<2x8x16xf32>
    %91 = tpu.matmul %88, %80, %cst_38 {dimension_numbers = #tpu.dot_dimension_numbers<[2], [1], [1], [2], [0, 0, 0, 1, 1, 2], [0], [0]>} : vector<2x8x8xf32>, vector<2x8x16xf32>, vector<2x8x16xf32> -> vector<2x8x16xf32>
    "tpu.trace_stop"() : () -> ()
    %92 = tpu.reciprocal %90 {approx = true} : vector<2x8x1xf32> -> vector<2x8x1xf32>
    %93 = vector.broadcast %92 : vector<2x8x1xf32> to vector<2x8x16xf32>
    %94 = arith.mulf %91, %93 : vector<2x8x16xf32>
    %95 = tpu.concatenate %77, %94 in 2 : vector<2x8x16xf32>, vector<2x8x16xf32> -> vector<2x8x32xf32>
    %96 = vector.shape_cast %95 : vector<2x8x32xf32> to vector<16x32xf32>
    %cst_39 = arith.constant dense<0.000000e+00> : vector<16x32xf32>
    %97 = tpu.matmul %96, %25, %cst_39 {dimension_numbers = #tpu.dot_dimension_numbers<[1], [0], [0], [1], [0, 0, 1, 1], [], []>} : vector<16x32xf32>, vector<32x32xf32>, vector<16x32xf32> -> vector<16x32xf32>
    %98 = arith.addf %0, %97 : vector<16x32xf32>
    %99 = vector.extract_strided_slice %17 {offsets = [6, 0], sizes = [1, 32], strides = [1, 1]} : vector<10x32xf32> to vector<1x32xf32>
    %100 = vector.broadcast %99 : vector<1x32xf32> to vector<16x32xf32>
    %101 = arith.addf %98, %100 : vector<16x32xf32>
    %102 = vector.extract_strided_slice %17 {offsets = [1, 0], sizes = [1, 32], strides = [1, 1]} : vector<10x32xf32> to vector<1x32xf32>
    %103 = vector.extract_strided_slice %17 {offsets = [4, 0], sizes = [1, 32], strides = [1, 1]} : vector<10x32xf32> to vector<1x32xf32>
    %cst_40 = arith.constant dense<0.000000e+00> : vector<16xf32>
    %104 = vector.multi_reduction <add>, %101, %cst_40 [1] : vector<16x32xf32> to vector<16xf32>
    %105 = vector.shape_cast %104 : vector<16xf32> to vector<16x1xf32>
    %cst_41 = arith.constant 3.200000e+01 : f32
    %106 = vector.broadcast %cst_41 : f32 to vector<16x1xf32>
    %107 = arith.divf %105, %106 : vector<16x1xf32>
    %108 = vector.broadcast %107 : vector<16x1xf32> to vector<16x32xf32>
    %109 = arith.subf %101, %108 : vector<16x32xf32>
    %110 = arith.mulf %109, %109 : vector<16x32xf32>
    %cst_42 = arith.constant dense<0.000000e+00> : vector<16xf32>
    %111 = vector.multi_reduction <add>, %110, %cst_42 [1] : vector<16x32xf32> to vector<16xf32>
    %112 = vector.shape_cast %111 : vector<16xf32> to vector<16x1xf32>
    %cst_43 = arith.constant 3.200000e+01 : f32
    %113 = vector.broadcast %cst_43 : f32 to vector<16x1xf32>
    %114 = arith.divf %112, %113 : vector<16x1xf32>
    %cst_44 = arith.constant 9.99999974E-6 : f32
    %115 = vector.broadcast %cst_44 : f32 to vector<16x1xf32>
    %116 = arith.addf %114, %115 : vector<16x1xf32>
    %117 = math.rsqrt %116 : vector<16x1xf32>
    %118 = vector.broadcast %117 : vector<16x1xf32> to vector<16x32xf32>
    %119 = arith.mulf %109, %118 : vector<16x32xf32>
    %120 = vector.broadcast %102 : vector<1x32xf32> to vector<16x32xf32>
    %121 = arith.mulf %119, %120 : vector<16x32xf32>
    %122 = vector.broadcast %103 : vector<1x32xf32> to vector<16x32xf32>
    %123 = arith.addf %121, %122 : vector<16x32xf32>
    %cst_45 = arith.constant dense<0.000000e+00> : vector<16x32xf32>
    %124 = tpu.matmul %123, %26, %cst_45 {dimension_numbers = #tpu.dot_dimension_numbers<[1], [0], [0], [1], [0, 0, 1, 1], [], []>} : vector<16x32xf32>, vector<32x32xf32>, vector<16x32xf32> -> vector<16x32xf32>
    %125 = vector.extract_strided_slice %17 {offsets = [7, 0], sizes = [1, 32], strides = [1, 1]} : vector<10x32xf32> to vector<1x32xf32>
    %126 = vector.broadcast %125 : vector<1x32xf32> to vector<16x32xf32>
    %127 = arith.addf %124, %126 : vector<16x32xf32>
    %cst_46 = arith.constant dense<0.000000e+00> : vector<16x64xf32>
    %128 = tpu.matmul %1, %27, %cst_46 {dimension_numbers = #tpu.dot_dimension_numbers<[1], [0], [0], [1], [0, 0, 1, 1], [], []>} : vector<16x32xf32>, vector<32x64xf32>, vector<16x64xf32> -> vector<16x64xf32>
    %129 = vector.extract_strided_slice %19 {offsets = [0, 0], sizes = [1, 64], strides = [1, 1]} : vector<2x64xf32> to vector<1x64xf32>
    %130 = vector.broadcast %129 : vector<1x64xf32> to vector<16x64xf32>
    %131 = arith.addf %128, %130 : vector<16x64xf32>
    %132 = vector.extract_strided_slice %131 {offsets = [0, 0], sizes = [16, 32], strides = [1, 1]} : vector<16x64xf32> to vector<16x32xf32>
    %133 = vector.extract_strided_slice %131 {offsets = [0, 32], sizes = [16, 32], strides = [1, 1]} : vector<16x64xf32> to vector<16x32xf32>
    %134 = vector.shape_cast %127 : vector<16x32xf32> to vector<2x8x32xf32>
    %135 = vector.shape_cast %132 : vector<16x32xf32> to vector<2x8x32xf32>
    %136 = vector.shape_cast %133 : vector<16x32xf32> to vector<2x8x32xf32>
    %137 = vector.extract_strided_slice %134 {offsets = [0, 0, 0], sizes = [2, 8, 16], strides = [1, 1, 1]} : vector<2x8x32xf32> to vector<2x8x16xf32>
    %138 = vector.extract_strided_slice %135 {offsets = [0, 0, 0], sizes = [2, 8, 16], strides = [1, 1, 1]} : vector<2x8x32xf32> to vector<2x8x16xf32>
    %139 = vector.extract_strided_slice %136 {offsets = [0, 0, 0], sizes = [2, 8, 16], strides = [1, 1, 1]} : vector<2x8x32xf32> to vector<2x8x16xf32>
    "tpu.trace_start"() <{level = 10 : i32, message = "bqd,bkd->bqk"}> : () -> ()
    %cst_47 = arith.constant dense<0.000000e+00> : vector<2x8x8xf32>
    %140 = tpu.matmul %137, %138, %cst_47 {dimension_numbers = #tpu.dot_dimension_numbers<[2], [2], [1], [1], [0, 0, 0, 1, 1, 1], [0], [0]>} : vector<2x8x16xf32>, vector<2x8x16xf32>, vector<2x8x8xf32> -> vector<2x8x8xf32>
    "tpu.trace_stop"() : () -> ()
    %141 = vector.broadcast %13 : vector<2x1x8xf32> to vector<2x8x8xf32>
    %142 = arith.addf %140, %141 : vector<2x8x8xf32>
    %cst_48 = arith.constant dense<0xFF800000> : vector<2x8xf32>
    %143 = vector.multi_reduction <maximumf>, %142, %cst_48 [2] : vector<2x8x8xf32> to vector<2x8xf32>
    %144 = vector.shape_cast %143 : vector<2x8xf32> to vector<2x8x1xf32>
    %145 = vector.broadcast %144 : vector<2x8x1xf32> to vector<2x8x8xf32>
    %146 = arith.subf %142, %145 : vector<2x8x8xf32>
    %147 = math.exp %146 : vector<2x8x8xf32>
    %cst_49 = arith.constant dense<0.000000e+00> : vector<2x8xf32>
    %148 = vector.multi_reduction <add>, %147, %cst_49 [2] : vector<2x8x8xf32> to vector<2x8xf32>
    %149 = vector.shape_cast %148 : vector<2x8xf32> to vector<2x8x1xf32>
    "tpu.trace_start"() <{level = 10 : i32, message = "bqk,bkd->bqd"}> : () -> ()
    %cst_50 = arith.constant dense<0.000000e+00> : vector<2x8x16xf32>
    %150 = tpu.matmul %147, %139, %cst_50 {dimension_numbers = #tpu.dot_dimension_numbers<[2], [1], [1], [2], [0, 0, 0, 1, 1, 2], [0], [0]>} : vector<2x8x8xf32>, vector<2x8x16xf32>, vector<2x8x16xf32> -> vector<2x8x16xf32>
    "tpu.trace_stop"() : () -> ()
    %151 = tpu.reciprocal %149 {approx = true} : vector<2x8x1xf32> -> vector<2x8x1xf32>
    %152 = vector.broadcast %151 : vector<2x8x1xf32> to vector<2x8x16xf32>
    %153 = arith.mulf %150, %152 : vector<2x8x16xf32>
    %154 = vector.extract_strided_slice %134 {offsets = [0, 0, 16], sizes = [2, 8, 16], strides = [1, 1, 1]} : vector<2x8x32xf32> to vector<2x8x16xf32>
    %155 = vector.extract_strided_slice %135 {offsets = [0, 0, 16], sizes = [2, 8, 16], strides = [1, 1, 1]} : vector<2x8x32xf32> to vector<2x8x16xf32>
    %156 = vector.extract_strided_slice %136 {offsets = [0, 0, 16], sizes = [2, 8, 16], strides = [1, 1, 1]} : vector<2x8x32xf32> to vector<2x8x16xf32>
    "tpu.trace_start"() <{level = 10 : i32, message = "bqd,bkd->bqk"}> : () -> ()
    %cst_51 = arith.constant dense<0.000000e+00> : vector<2x8x8xf32>
    %157 = tpu.matmul %154, %155, %cst_51 {dimension_numbers = #tpu.dot_dimension_numbers<[2], [2], [1], [1], [0, 0, 0, 1, 1, 1], [0], [0]>} : vector<2x8x16xf32>, vector<2x8x16xf32>, vector<2x8x8xf32> -> vector<2x8x8xf32>
    "tpu.trace_stop"() : () -> ()
    %158 = vector.broadcast %13 : vector<2x1x8xf32> to vector<2x8x8xf32>
    %159 = arith.addf %157, %158 : vector<2x8x8xf32>
    %cst_52 = arith.constant dense<0xFF800000> : vector<2x8xf32>
    %160 = vector.multi_reduction <maximumf>, %159, %cst_52 [2] : vector<2x8x8xf32> to vector<2x8xf32>
    %161 = vector.shape_cast %160 : vector<2x8xf32> to vector<2x8x1xf32>
    %162 = vector.broadcast %161 : vector<2x8x1xf32> to vector<2x8x8xf32>
    %163 = arith.subf %159, %162 : vector<2x8x8xf32>
    %164 = math.exp %163 : vector<2x8x8xf32>
    %cst_53 = arith.constant dense<0.000000e+00> : vector<2x8xf32>
    %165 = vector.multi_reduction <add>, %164, %cst_53 [2] : vector<2x8x8xf32> to vector<2x8xf32>
    %166 = vector.shape_cast %165 : vector<2x8xf32> to vector<2x8x1xf32>
    "tpu.trace_start"() <{level = 10 : i32, message = "bqk,bkd->bqd"}> : () -> ()
    %cst_54 = arith.constant dense<0.000000e+00> : vector<2x8x16xf32>
    %167 = tpu.matmul %164, %156, %cst_54 {dimension_numbers = #tpu.dot_dimension_numbers<[2], [1], [1], [2], [0, 0, 0, 1, 1, 2], [0], [0]>} : vector<2x8x8xf32>, vector<2x8x16xf32>, vector<2x8x16xf32> -> vector<2x8x16xf32>
    "tpu.trace_stop"() : () -> ()
    %168 = tpu.reciprocal %166 {approx = true} : vector<2x8x1xf32> -> vector<2x8x1xf32>
    %169 = vector.broadcast %168 : vector<2x8x1xf32> to vector<2x8x16xf32>
    %170 = arith.mulf %167, %169 : vector<2x8x16xf32>
    %171 = tpu.concatenate %153, %170 in 2 : vector<2x8x16xf32>, vector<2x8x16xf32> -> vector<2x8x32xf32>
    %172 = vector.shape_cast %171 : vector<2x8x32xf32> to vector<16x32xf32>
    %cst_55 = arith.constant dense<0.000000e+00> : vector<16x32xf32>
    %173 = tpu.matmul %172, %28, %cst_55 {dimension_numbers = #tpu.dot_dimension_numbers<[1], [0], [0], [1], [0, 0, 1, 1], [], []>} : vector<16x32xf32>, vector<32x32xf32>, vector<16x32xf32> -> vector<16x32xf32>
    %174 = arith.addf %101, %173 : vector<16x32xf32>
    %175 = vector.extract_strided_slice %17 {offsets = [8, 0], sizes = [1, 32], strides = [1, 1]} : vector<10x32xf32> to vector<1x32xf32>
    %176 = vector.broadcast %175 : vector<1x32xf32> to vector<16x32xf32>
    %177 = arith.addf %174, %176 : vector<16x32xf32>
    %178 = vector.extract_strided_slice %17 {offsets = [2, 0], sizes = [1, 32], strides = [1, 1]} : vector<10x32xf32> to vector<1x32xf32>
    %179 = vector.extract_strided_slice %17 {offsets = [5, 0], sizes = [1, 32], strides = [1, 1]} : vector<10x32xf32> to vector<1x32xf32>
    %cst_56 = arith.constant dense<0.000000e+00> : vector<16xf32>
    %180 = vector.multi_reduction <add>, %177, %cst_56 [1] : vector<16x32xf32> to vector<16xf32>
    %181 = vector.shape_cast %180 : vector<16xf32> to vector<16x1xf32>
    %cst_57 = arith.constant 3.200000e+01 : f32
    %182 = vector.broadcast %cst_57 : f32 to vector<16x1xf32>
    %183 = arith.divf %181, %182 : vector<16x1xf32>
    %184 = vector.broadcast %183 : vector<16x1xf32> to vector<16x32xf32>
    %185 = arith.subf %177, %184 : vector<16x32xf32>
    %186 = arith.mulf %185, %185 : vector<16x32xf32>
    %cst_58 = arith.constant dense<0.000000e+00> : vector<16xf32>
    %187 = vector.multi_reduction <add>, %186, %cst_58 [1] : vector<16x32xf32> to vector<16xf32>
    %188 = vector.shape_cast %187 : vector<16xf32> to vector<16x1xf32>
    %cst_59 = arith.constant 3.200000e+01 : f32
    %189 = vector.broadcast %cst_59 : f32 to vector<16x1xf32>
    %190 = arith.divf %188, %189 : vector<16x1xf32>
    %cst_60 = arith.constant 9.99999974E-6 : f32
    %191 = vector.broadcast %cst_60 : f32 to vector<16x1xf32>
    %192 = arith.addf %190, %191 : vector<16x1xf32>
    %193 = math.rsqrt %192 : vector<16x1xf32>
    %194 = vector.broadcast %193 : vector<16x1xf32> to vector<16x32xf32>
    %195 = arith.mulf %185, %194 : vector<16x32xf32>
    %196 = vector.broadcast %178 : vector<1x32xf32> to vector<16x32xf32>
    %197 = arith.mulf %195, %196 : vector<16x32xf32>
    %198 = vector.broadcast %179 : vector<1x32xf32> to vector<16x32xf32>
    %199 = arith.addf %197, %198 : vector<16x32xf32>
    %cst_61 = arith.constant dense<0.000000e+00> : vector<16x64xf32>
    %200 = tpu.matmul %199, %29, %cst_61 {dimension_numbers = #tpu.dot_dimension_numbers<[1], [0], [0], [1], [0, 0, 1, 1], [], []>} : vector<16x32xf32>, vector<32x64xf32>, vector<16x64xf32> -> vector<16x64xf32>
    %201 = vector.extract_strided_slice %19 {offsets = [1, 0], sizes = [1, 64], strides = [1, 1]} : vector<2x64xf32> to vector<1x64xf32>
    %202 = vector.broadcast %201 : vector<1x64xf32> to vector<16x64xf32>
    %203 = arith.addf %200, %202 : vector<16x64xf32>
    %cst_62 = arith.constant 0.000000e+00 : f32
    %204 = vector.broadcast %cst_62 : f32 to vector<16x64xf32>
    %205 = arith.maximumf %203, %204 : vector<16x64xf32>
    %cst_63 = arith.constant dense<0.000000e+00> : vector<16x32xf32>
    %206 = tpu.matmul %205, %23, %cst_63 {dimension_numbers = #tpu.dot_dimension_numbers<[1], [0], [0], [1], [0, 0, 1, 1], [], []>} : vector<16x64xf32>, vector<64x32xf32>, vector<16x32xf32> -> vector<16x32xf32>
    %207 = arith.addf %177, %206 : vector<16x32xf32>
    %208 = vector.extract_strided_slice %17 {offsets = [9, 0], sizes = [1, 32], strides = [1, 1]} : vector<10x32xf32> to vector<1x32xf32>
    %209 = vector.broadcast %208 : vector<1x32xf32> to vector<16x32xf32>
    %210 = arith.addf %207, %209 : vector<16x32xf32>
    %c1 = arith.constant 1 : index
    %c0_64 = arith.constant 0 : index
    %c0_65 = arith.constant 0 : index
    %211 = vector.load %arg3[%c1, %c0_64, %c0_65] : memref<2x32x320xf32, #tpu.memory_space<vmem>>, vector<1x32x320xf32>
    %212 = vector.shape_cast %211 : vector<1x32x320xf32> to vector<32x320xf32>
    %c1_66 = arith.constant 1 : index
    %c0_67 = arith.constant 0 : index
    %c0_68 = arith.constant 0 : index
    %213 = vector.load %arg5[%c1_66, %c0_67, %c0_68] : memref<2x10x32xf32, #tpu.memory_space<vmem>>, vector<1x10x32xf32>
    %214 = vector.shape_cast %213 : vector<1x10x32xf32> to vector<10x32xf32>
    %c1_69 = arith.constant 1 : index
    %c0_70 = arith.constant 0 : index
    %c0_71 = arith.constant 0 : index
    %215 = vector.load %arg6[%c1_69, %c0_70, %c0_71] : memref<2x2x64xf32, #tpu.memory_space<vmem>>, vector<1x2x64xf32>
    %216 = vector.shape_cast %215 : vector<1x2x64xf32> to vector<2x64xf32>
    %c1_72 = arith.constant 1 : index
    %c0_73 = arith.constant 0 : index
    %c0_74 = arith.constant 0 : index
    %217 = vector.load %arg7[%c1_72, %c0_73, %c0_74] : memref<2x1x96xf32, #tpu.memory_space<vmem>>, vector<1x1x96xf32>
    %218 = vector.shape_cast %217 : vector<1x1x96xf32> to vector<1x96xf32>
    %c1_75 = arith.constant 1 : index
    %c0_76 = arith.constant 0 : index
    %c0_77 = arith.constant 0 : index
    %219 = vector.load %arg4[%c1_75, %c0_76, %c0_77] : memref<2x64x32xf32, #tpu.memory_space<vmem>>, vector<1x64x32xf32>
    %220 = vector.shape_cast %219 : vector<1x64x32xf32> to vector<64x32xf32>
    %221 = vector.extract_strided_slice %212 {offsets = [0, 0], sizes = [32, 96], strides = [1, 1]} : vector<32x320xf32> to vector<32x96xf32>
    %222 = vector.extract_strided_slice %212 {offsets = [0, 96], sizes = [32, 32], strides = [1, 1]} : vector<32x320xf32> to vector<32x32xf32>
    %223 = vector.extract_strided_slice %212 {offsets = [0, 128], sizes = [32, 32], strides = [1, 1]} : vector<32x320xf32> to vector<32x32xf32>
    %224 = vector.extract_strided_slice %212 {offsets = [0, 160], sizes = [32, 64], strides = [1, 1]} : vector<32x320xf32> to vector<32x64xf32>
    %225 = vector.extract_strided_slice %212 {offsets = [0, 224], sizes = [32, 32], strides = [1, 1]} : vector<32x320xf32> to vector<32x32xf32>
    %226 = vector.extract_strided_slice %212 {offsets = [0, 256], sizes = [32, 64], strides = [1, 1]} : vector<32x320xf32> to vector<32x64xf32>
    %227 = vector.extract_strided_slice %214 {offsets = [0, 0], sizes = [1, 32], strides = [1, 1]} : vector<10x32xf32> to vector<1x32xf32>
    %228 = vector.extract_strided_slice %214 {offsets = [3, 0], sizes = [1, 32], strides = [1, 1]} : vector<10x32xf32> to vector<1x32xf32>
    %cst_78 = arith.constant dense<0.000000e+00> : vector<16xf32>
    %229 = vector.multi_reduction <add>, %210, %cst_78 [1] : vector<16x32xf32> to vector<16xf32>
    %230 = vector.shape_cast %229 : vector<16xf32> to vector<16x1xf32>
    %cst_79 = arith.constant 3.200000e+01 : f32
    %231 = vector.broadcast %cst_79 : f32 to vector<16x1xf32>
    %232 = arith.divf %230, %231 : vector<16x1xf32>
    %233 = vector.broadcast %232 : vector<16x1xf32> to vector<16x32xf32>
    %234 = arith.subf %210, %233 : vector<16x32xf32>
    %235 = arith.mulf %234, %234 : vector<16x32xf32>
    %cst_80 = arith.constant dense<0.000000e+00> : vector<16xf32>
    %236 = vector.multi_reduction <add>, %235, %cst_80 [1] : vector<16x32xf32> to vector<16xf32>
    %237 = vector.shape_cast %236 : vector<16xf32> to vector<16x1xf32>
    %cst_81 = arith.constant 3.200000e+01 : f32
    %238 = vector.broadcast %cst_81 : f32 to vector<16x1xf32>
    %239 = arith.divf %237, %238 : vector<16x1xf32>
    %cst_82 = arith.constant 9.99999974E-6 : f32
    %240 = vector.broadcast %cst_82 : f32 to vector<16x1xf32>
    %241 = arith.addf %239, %240 : vector<16x1xf32>
    %242 = math.rsqrt %241 : vector<16x1xf32>
    %243 = vector.broadcast %242 : vector<16x1xf32> to vector<16x32xf32>
    %244 = arith.mulf %234, %243 : vector<16x32xf32>
    %245 = vector.broadcast %227 : vector<1x32xf32> to vector<16x32xf32>
    %246 = arith.mulf %244, %245 : vector<16x32xf32>
    %247 = vector.broadcast %228 : vector<1x32xf32> to vector<16x32xf32>
    %248 = arith.addf %246, %247 : vector<16x32xf32>
    %cst_83 = arith.constant dense<0.000000e+00> : vector<16x96xf32>
    %249 = tpu.matmul %248, %221, %cst_83 {dimension_numbers = #tpu.dot_dimension_numbers<[1], [0], [0], [1], [0, 0, 1, 1], [], []>} : vector<16x32xf32>, vector<32x96xf32>, vector<16x96xf32> -> vector<16x96xf32>
    %250 = vector.broadcast %218 : vector<1x96xf32> to vector<16x96xf32>
    %251 = arith.addf %249, %250 : vector<16x96xf32>
    %252 = vector.extract_strided_slice %251 {offsets = [0, 0], sizes = [16, 32], strides = [1, 1]} : vector<16x96xf32> to vector<16x32xf32>
    %253 = vector.extract_strided_slice %251 {offsets = [0, 32], sizes = [16, 32], strides = [1, 1]} : vector<16x96xf32> to vector<16x32xf32>
    %254 = vector.extract_strided_slice %251 {offsets = [0, 64], sizes = [16, 32], strides = [1, 1]} : vector<16x96xf32> to vector<16x32xf32>
    %255 = vector.shape_cast %252 : vector<16x32xf32> to vector<2x8x32xf32>
    %256 = vector.shape_cast %253 : vector<16x32xf32> to vector<2x8x32xf32>
    %257 = vector.shape_cast %254 : vector<16x32xf32> to vector<2x8x32xf32>
    %258 = vector.extract_strided_slice %255 {offsets = [0, 0, 0], sizes = [2, 8, 16], strides = [1, 1, 1]} : vector<2x8x32xf32> to vector<2x8x16xf32>
    %259 = vector.extract_strided_slice %256 {offsets = [0, 0, 0], sizes = [2, 8, 16], strides = [1, 1, 1]} : vector<2x8x32xf32> to vector<2x8x16xf32>
    %260 = vector.extract_strided_slice %257 {offsets = [0, 0, 0], sizes = [2, 8, 16], strides = [1, 1, 1]} : vector<2x8x32xf32> to vector<2x8x16xf32>
    "tpu.trace_start"() <{level = 10 : i32, message = "bqd,bkd->bqk"}> : () -> ()
    %cst_84 = arith.constant dense<0.000000e+00> : vector<2x8x8xf32>
    %261 = tpu.matmul %258, %259, %cst_84 {dimension_numbers = #tpu.dot_dimension_numbers<[2], [2], [1], [1], [0, 0, 0, 1, 1, 1], [0], [0]>} : vector<2x8x16xf32>, vector<2x8x16xf32>, vector<2x8x8xf32> -> vector<2x8x8xf32>
    "tpu.trace_stop"() : () -> ()
    %262 = vector.broadcast %7 : vector<1x8x8xf32> to vector<2x8x8xf32>
    %263 = arith.addf %261, %262 : vector<2x8x8xf32>
    %cst_85 = arith.constant dense<0xFF800000> : vector<2x8xf32>
    %264 = vector.multi_reduction <maximumf>, %263, %cst_85 [2] : vector<2x8x8xf32> to vector<2x8xf32>
    %265 = vector.shape_cast %264 : vector<2x8xf32> to vector<2x8x1xf32>
    %266 = vector.broadcast %265 : vector<2x8x1xf32> to vector<2x8x8xf32>
    %267 = arith.subf %263, %266 : vector<2x8x8xf32>
    %268 = math.exp %267 : vector<2x8x8xf32>
    %cst_86 = arith.constant dense<0.000000e+00> : vector<2x8xf32>
    %269 = vector.multi_reduction <add>, %268, %cst_86 [2] : vector<2x8x8xf32> to vector<2x8xf32>
    %270 = vector.shape_cast %269 : vector<2x8xf32> to vector<2x8x1xf32>
    "tpu.trace_start"() <{level = 10 : i32, message = "bqk,bkd->bqd"}> : () -> ()
    %cst_87 = arith.constant dense<0.000000e+00> : vector<2x8x16xf32>
    %271 = tpu.matmul %268, %260, %cst_87 {dimension_numbers = #tpu.dot_dimension_numbers<[2], [1], [1], [2], [0, 0, 0, 1, 1, 2], [0], [0]>} : vector<2x8x8xf32>, vector<2x8x16xf32>, vector<2x8x16xf32> -> vector<2x8x16xf32>
    "tpu.trace_stop"() : () -> ()
    %272 = tpu.reciprocal %270 {approx = true} : vector<2x8x1xf32> -> vector<2x8x1xf32>
    %273 = vector.broadcast %272 : vector<2x8x1xf32> to vector<2x8x16xf32>
    %274 = arith.mulf %271, %273 : vector<2x8x16xf32>
    %275 = vector.extract_strided_slice %255 {offsets = [0, 0, 16], sizes = [2, 8, 16], strides = [1, 1, 1]} : vector<2x8x32xf32> to vector<2x8x16xf32>
    %276 = vector.extract_strided_slice %256 {offsets = [0, 0, 16], sizes = [2, 8, 16], strides = [1, 1, 1]} : vector<2x8x32xf32> to vector<2x8x16xf32>
    %277 = vector.extract_strided_slice %257 {offsets = [0, 0, 16], sizes = [2, 8, 16], strides = [1, 1, 1]} : vector<2x8x32xf32> to vector<2x8x16xf32>
    "tpu.trace_start"() <{level = 10 : i32, message = "bqd,bkd->bqk"}> : () -> ()
    %cst_88 = arith.constant dense<0.000000e+00> : vector<2x8x8xf32>
    %278 = tpu.matmul %275, %276, %cst_88 {dimension_numbers = #tpu.dot_dimension_numbers<[2], [2], [1], [1], [0, 0, 0, 1, 1, 1], [0], [0]>} : vector<2x8x16xf32>, vector<2x8x16xf32>, vector<2x8x8xf32> -> vector<2x8x8xf32>
    "tpu.trace_stop"() : () -> ()
    %279 = vector.broadcast %7 : vector<1x8x8xf32> to vector<2x8x8xf32>
    %280 = arith.addf %278, %279 : vector<2x8x8xf32>
    %cst_89 = arith.constant dense<0xFF800000> : vector<2x8xf32>
    %281 = vector.multi_reduction <maximumf>, %280, %cst_89 [2] : vector<2x8x8xf32> to vector<2x8xf32>
    %282 = vector.shape_cast %281 : vector<2x8xf32> to vector<2x8x1xf32>
    %283 = vector.broadcast %282 : vector<2x8x1xf32> to vector<2x8x8xf32>
    %284 = arith.subf %280, %283 : vector<2x8x8xf32>
    %285 = math.exp %284 : vector<2x8x8xf32>
    %cst_90 = arith.constant dense<0.000000e+00> : vector<2x8xf32>
    %286 = vector.multi_reduction <add>, %285, %cst_90 [2] : vector<2x8x8xf32> to vector<2x8xf32>
    %287 = vector.shape_cast %286 : vector<2x8xf32> to vector<2x8x1xf32>
    "tpu.trace_start"() <{level = 10 : i32, message = "bqk,bkd->bqd"}> : () -> ()
    %cst_91 = arith.constant dense<0.000000e+00> : vector<2x8x16xf32>
    %288 = tpu.matmul %285, %277, %cst_91 {dimension_numbers = #tpu.dot_dimension_numbers<[2], [1], [1], [2], [0, 0, 0, 1, 1, 2], [0], [0]>} : vector<2x8x8xf32>, vector<2x8x16xf32>, vector<2x8x16xf32> -> vector<2x8x16xf32>
    "tpu.trace_stop"() : () -> ()
    %289 = tpu.reciprocal %287 {approx = true} : vector<2x8x1xf32> -> vector<2x8x1xf32>
    %290 = vector.broadcast %289 : vector<2x8x1xf32> to vector<2x8x16xf32>
    %291 = arith.mulf %288, %290 : vector<2x8x16xf32>
    %292 = tpu.concatenate %274, %291 in 2 : vector<2x8x16xf32>, vector<2x8x16xf32> -> vector<2x8x32xf32>
    %293 = vector.shape_cast %292 : vector<2x8x32xf32> to vector<16x32xf32>
    %cst_92 = arith.constant dense<0.000000e+00> : vector<16x32xf32>
    %294 = tpu.matmul %293, %222, %cst_92 {dimension_numbers = #tpu.dot_dimension_numbers<[1], [0], [0], [1], [0, 0, 1, 1], [], []>} : vector<16x32xf32>, vector<32x32xf32>, vector<16x32xf32> -> vector<16x32xf32>
    %295 = arith.addf %210, %294 : vector<16x32xf32>
    %296 = vector.extract_strided_slice %214 {offsets = [6, 0], sizes = [1, 32], strides = [1, 1]} : vector<10x32xf32> to vector<1x32xf32>
    %297 = vector.broadcast %296 : vector<1x32xf32> to vector<16x32xf32>
    %298 = arith.addf %295, %297 : vector<16x32xf32>
    %299 = vector.extract_strided_slice %214 {offsets = [1, 0], sizes = [1, 32], strides = [1, 1]} : vector<10x32xf32> to vector<1x32xf32>
    %300 = vector.extract_strided_slice %214 {offsets = [4, 0], sizes = [1, 32], strides = [1, 1]} : vector<10x32xf32> to vector<1x32xf32>
    %cst_93 = arith.constant dense<0.000000e+00> : vector<16xf32>
    %301 = vector.multi_reduction <add>, %298, %cst_93 [1] : vector<16x32xf32> to vector<16xf32>
    %302 = vector.shape_cast %301 : vector<16xf32> to vector<16x1xf32>
    %cst_94 = arith.constant 3.200000e+01 : f32
    %303 = vector.broadcast %cst_94 : f32 to vector<16x1xf32>
    %304 = arith.divf %302, %303 : vector<16x1xf32>
    %305 = vector.broadcast %304 : vector<16x1xf32> to vector<16x32xf32>
    %306 = arith.subf %298, %305 : vector<16x32xf32>
    %307 = arith.mulf %306, %306 : vector<16x32xf32>
    %cst_95 = arith.constant dense<0.000000e+00> : vector<16xf32>
    %308 = vector.multi_reduction <add>, %307, %cst_95 [1] : vector<16x32xf32> to vector<16xf32>
    %309 = vector.shape_cast %308 : vector<16xf32> to vector<16x1xf32>
    %cst_96 = arith.constant 3.200000e+01 : f32
    %310 = vector.broadcast %cst_96 : f32 to vector<16x1xf32>
    %311 = arith.divf %309, %310 : vector<16x1xf32>
    %cst_97 = arith.constant 9.99999974E-6 : f32
    %312 = vector.broadcast %cst_97 : f32 to vector<16x1xf32>
    %313 = arith.addf %311, %312 : vector<16x1xf32>
    %314 = math.rsqrt %313 : vector<16x1xf32>
    %315 = vector.broadcast %314 : vector<16x1xf32> to vector<16x32xf32>
    %316 = arith.mulf %306, %315 : vector<16x32xf32>
    %317 = vector.broadcast %299 : vector<1x32xf32> to vector<16x32xf32>
    %318 = arith.mulf %316, %317 : vector<16x32xf32>
    %319 = vector.broadcast %300 : vector<1x32xf32> to vector<16x32xf32>
    %320 = arith.addf %318, %319 : vector<16x32xf32>
    %cst_98 = arith.constant dense<0.000000e+00> : vector<16x32xf32>
    %321 = tpu.matmul %320, %223, %cst_98 {dimension_numbers = #tpu.dot_dimension_numbers<[1], [0], [0], [1], [0, 0, 1, 1], [], []>} : vector<16x32xf32>, vector<32x32xf32>, vector<16x32xf32> -> vector<16x32xf32>
    %322 = vector.extract_strided_slice %214 {offsets = [7, 0], sizes = [1, 32], strides = [1, 1]} : vector<10x32xf32> to vector<1x32xf32>
    %323 = vector.broadcast %322 : vector<1x32xf32> to vector<16x32xf32>
    %324 = arith.addf %321, %323 : vector<16x32xf32>
    %cst_99 = arith.constant dense<0.000000e+00> : vector<16x64xf32>
    %325 = tpu.matmul %1, %224, %cst_99 {dimension_numbers = #tpu.dot_dimension_numbers<[1], [0], [0], [1], [0, 0, 1, 1], [], []>} : vector<16x32xf32>, vector<32x64xf32>, vector<16x64xf32> -> vector<16x64xf32>
    %326 = vector.extract_strided_slice %216 {offsets = [0, 0], sizes = [1, 64], strides = [1, 1]} : vector<2x64xf32> to vector<1x64xf32>
    %327 = vector.broadcast %326 : vector<1x64xf32> to vector<16x64xf32>
    %328 = arith.addf %325, %327 : vector<16x64xf32>
    %329 = vector.extract_strided_slice %328 {offsets = [0, 0], sizes = [16, 32], strides = [1, 1]} : vector<16x64xf32> to vector<16x32xf32>
    %330 = vector.extract_strided_slice %328 {offsets = [0, 32], sizes = [16, 32], strides = [1, 1]} : vector<16x64xf32> to vector<16x32xf32>
    %331 = vector.shape_cast %324 : vector<16x32xf32> to vector<2x8x32xf32>
    %332 = vector.shape_cast %329 : vector<16x32xf32> to vector<2x8x32xf32>
    %333 = vector.shape_cast %330 : vector<16x32xf32> to vector<2x8x32xf32>
    %334 = vector.extract_strided_slice %331 {offsets = [0, 0, 0], sizes = [2, 8, 16], strides = [1, 1, 1]} : vector<2x8x32xf32> to vector<2x8x16xf32>
    %335 = vector.extract_strided_slice %332 {offsets = [0, 0, 0], sizes = [2, 8, 16], strides = [1, 1, 1]} : vector<2x8x32xf32> to vector<2x8x16xf32>
    %336 = vector.extract_strided_slice %333 {offsets = [0, 0, 0], sizes = [2, 8, 16], strides = [1, 1, 1]} : vector<2x8x32xf32> to vector<2x8x16xf32>
    "tpu.trace_start"() <{level = 10 : i32, message = "bqd,bkd->bqk"}> : () -> ()
    %cst_100 = arith.constant dense<0.000000e+00> : vector<2x8x8xf32>
    %337 = tpu.matmul %334, %335, %cst_100 {dimension_numbers = #tpu.dot_dimension_numbers<[2], [2], [1], [1], [0, 0, 0, 1, 1, 1], [0], [0]>} : vector<2x8x16xf32>, vector<2x8x16xf32>, vector<2x8x8xf32> -> vector<2x8x8xf32>
    "tpu.trace_stop"() : () -> ()
    %338 = vector.broadcast %13 : vector<2x1x8xf32> to vector<2x8x8xf32>
    %339 = arith.addf %337, %338 : vector<2x8x8xf32>
    %cst_101 = arith.constant dense<0xFF800000> : vector<2x8xf32>
    %340 = vector.multi_reduction <maximumf>, %339, %cst_101 [2] : vector<2x8x8xf32> to vector<2x8xf32>
    %341 = vector.shape_cast %340 : vector<2x8xf32> to vector<2x8x1xf32>
    %342 = vector.broadcast %341 : vector<2x8x1xf32> to vector<2x8x8xf32>
    %343 = arith.subf %339, %342 : vector<2x8x8xf32>
    %344 = math.exp %343 : vector<2x8x8xf32>
    %cst_102 = arith.constant dense<0.000000e+00> : vector<2x8xf32>
    %345 = vector.multi_reduction <add>, %344, %cst_102 [2] : vector<2x8x8xf32> to vector<2x8xf32>
    %346 = vector.shape_cast %345 : vector<2x8xf32> to vector<2x8x1xf32>
    "tpu.trace_start"() <{level = 10 : i32, message = "bqk,bkd->bqd"}> : () -> ()
    %cst_103 = arith.constant dense<0.000000e+00> : vector<2x8x16xf32>
    %347 = tpu.matmul %344, %336, %cst_103 {dimension_numbers = #tpu.dot_dimension_numbers<[2], [1], [1], [2], [0, 0, 0, 1, 1, 2], [0], [0]>} : vector<2x8x8xf32>, vector<2x8x16xf32>, vector<2x8x16xf32> -> vector<2x8x16xf32>
    "tpu.trace_stop"() : () -> ()
    %348 = tpu.reciprocal %346 {approx = true} : vector<2x8x1xf32> -> vector<2x8x1xf32>
    %349 = vector.broadcast %348 : vector<2x8x1xf32> to vector<2x8x16xf32>
    %350 = arith.mulf %347, %349 : vector<2x8x16xf32>
    %351 = vector.extract_strided_slice %331 {offsets = [0, 0, 16], sizes = [2, 8, 16], strides = [1, 1, 1]} : vector<2x8x32xf32> to vector<2x8x16xf32>
    %352 = vector.extract_strided_slice %332 {offsets = [0, 0, 16], sizes = [2, 8, 16], strides = [1, 1, 1]} : vector<2x8x32xf32> to vector<2x8x16xf32>
    %353 = vector.extract_strided_slice %333 {offsets = [0, 0, 16], sizes = [2, 8, 16], strides = [1, 1, 1]} : vector<2x8x32xf32> to vector<2x8x16xf32>
    "tpu.trace_start"() <{level = 10 : i32, message = "bqd,bkd->bqk"}> : () -> ()
    %cst_104 = arith.constant dense<0.000000e+00> : vector<2x8x8xf32>
    %354 = tpu.matmul %351, %352, %cst_104 {dimension_numbers = #tpu.dot_dimension_numbers<[2], [2], [1], [1], [0, 0, 0, 1, 1, 1], [0], [0]>} : vector<2x8x16xf32>, vector<2x8x16xf32>, vector<2x8x8xf32> -> vector<2x8x8xf32>
    "tpu.trace_stop"() : () -> ()
    %355 = vector.broadcast %13 : vector<2x1x8xf32> to vector<2x8x8xf32>
    %356 = arith.addf %354, %355 : vector<2x8x8xf32>
    %cst_105 = arith.constant dense<0xFF800000> : vector<2x8xf32>
    %357 = vector.multi_reduction <maximumf>, %356, %cst_105 [2] : vector<2x8x8xf32> to vector<2x8xf32>
    %358 = vector.shape_cast %357 : vector<2x8xf32> to vector<2x8x1xf32>
    %359 = vector.broadcast %358 : vector<2x8x1xf32> to vector<2x8x8xf32>
    %360 = arith.subf %356, %359 : vector<2x8x8xf32>
    %361 = math.exp %360 : vector<2x8x8xf32>
    %cst_106 = arith.constant dense<0.000000e+00> : vector<2x8xf32>
    %362 = vector.multi_reduction <add>, %361, %cst_106 [2] : vector<2x8x8xf32> to vector<2x8xf32>
    %363 = vector.shape_cast %362 : vector<2x8xf32> to vector<2x8x1xf32>
    "tpu.trace_start"() <{level = 10 : i32, message = "bqk,bkd->bqd"}> : () -> ()
    %cst_107 = arith.constant dense<0.000000e+00> : vector<2x8x16xf32>
    %364 = tpu.matmul %361, %353, %cst_107 {dimension_numbers = #tpu.dot_dimension_numbers<[2], [1], [1], [2], [0, 0, 0, 1, 1, 2], [0], [0]>} : vector<2x8x8xf32>, vector<2x8x16xf32>, vector<2x8x16xf32> -> vector<2x8x16xf32>
    "tpu.trace_stop"() : () -> ()
    %365 = tpu.reciprocal %363 {approx = true} : vector<2x8x1xf32> -> vector<2x8x1xf32>
    %366 = vector.broadcast %365 : vector<2x8x1xf32> to vector<2x8x16xf32>
    %367 = arith.mulf %364, %366 : vector<2x8x16xf32>
    %368 = tpu.concatenate %350, %367 in 2 : vector<2x8x16xf32>, vector<2x8x16xf32> -> vector<2x8x32xf32>
    %369 = vector.shape_cast %368 : vector<2x8x32xf32> to vector<16x32xf32>
    %cst_108 = arith.constant dense<0.000000e+00> : vector<16x32xf32>
    %370 = tpu.matmul %369, %225, %cst_108 {dimension_numbers = #tpu.dot_dimension_numbers<[1], [0], [0], [1], [0, 0, 1, 1], [], []>} : vector<16x32xf32>, vector<32x32xf32>, vector<16x32xf32> -> vector<16x32xf32>
    %371 = arith.addf %298, %370 : vector<16x32xf32>
    %372 = vector.extract_strided_slice %214 {offsets = [8, 0], sizes = [1, 32], strides = [1, 1]} : vector<10x32xf32> to vector<1x32xf32>
    %373 = vector.broadcast %372 : vector<1x32xf32> to vector<16x32xf32>
    %374 = arith.addf %371, %373 : vector<16x32xf32>
    %375 = vector.extract_strided_slice %214 {offsets = [2, 0], sizes = [1, 32], strides = [1, 1]} : vector<10x32xf32> to vector<1x32xf32>
    %376 = vector.extract_strided_slice %214 {offsets = [5, 0], sizes = [1, 32], strides = [1, 1]} : vector<10x32xf32> to vector<1x32xf32>
    %cst_109 = arith.constant dense<0.000000e+00> : vector<16xf32>
    %377 = vector.multi_reduction <add>, %374, %cst_109 [1] : vector<16x32xf32> to vector<16xf32>
    %378 = vector.shape_cast %377 : vector<16xf32> to vector<16x1xf32>
    %cst_110 = arith.constant 3.200000e+01 : f32
    %379 = vector.broadcast %cst_110 : f32 to vector<16x1xf32>
    %380 = arith.divf %378, %379 : vector<16x1xf32>
    %381 = vector.broadcast %380 : vector<16x1xf32> to vector<16x32xf32>
    %382 = arith.subf %374, %381 : vector<16x32xf32>
    %383 = arith.mulf %382, %382 : vector<16x32xf32>
    %cst_111 = arith.constant dense<0.000000e+00> : vector<16xf32>
    %384 = vector.multi_reduction <add>, %383, %cst_111 [1] : vector<16x32xf32> to vector<16xf32>
    %385 = vector.shape_cast %384 : vector<16xf32> to vector<16x1xf32>
    %cst_112 = arith.constant 3.200000e+01 : f32
    %386 = vector.broadcast %cst_112 : f32 to vector<16x1xf32>
    %387 = arith.divf %385, %386 : vector<16x1xf32>
    %cst_113 = arith.constant 9.99999974E-6 : f32
    %388 = vector.broadcast %cst_113 : f32 to vector<16x1xf32>
    %389 = arith.addf %387, %388 : vector<16x1xf32>
    %390 = math.rsqrt %389 : vector<16x1xf32>
    %391 = vector.broadcast %390 : vector<16x1xf32> to vector<16x32xf32>
    %392 = arith.mulf %382, %391 : vector<16x32xf32>
    %393 = vector.broadcast %375 : vector<1x32xf32> to vector<16x32xf32>
    %394 = arith.mulf %392, %393 : vector<16x32xf32>
    %395 = vector.broadcast %376 : vector<1x32xf32> to vector<16x32xf32>
    %396 = arith.addf %394, %395 : vector<16x32xf32>
    %cst_114 = arith.constant dense<0.000000e+00> : vector<16x64xf32>
    %397 = tpu.matmul %396, %226, %cst_114 {dimension_numbers = #tpu.dot_dimension_numbers<[1], [0], [0], [1], [0, 0, 1, 1], [], []>} : vector<16x32xf32>, vector<32x64xf32>, vector<16x64xf32> -> vector<16x64xf32>
    %398 = vector.extract_strided_slice %216 {offsets = [1, 0], sizes = [1, 64], strides = [1, 1]} : vector<2x64xf32> to vector<1x64xf32>
    %399 = vector.broadcast %398 : vector<1x64xf32> to vector<16x64xf32>
    %400 = arith.addf %397, %399 : vector<16x64xf32>
    %cst_115 = arith.constant 0.000000e+00 : f32
    %401 = vector.broadcast %cst_115 : f32 to vector<16x64xf32>
    %402 = arith.maximumf %400, %401 : vector<16x64xf32>
    %cst_116 = arith.constant dense<0.000000e+00> : vector<16x32xf32>
    %403 = tpu.matmul %402, %220, %cst_116 {dimension_numbers = #tpu.dot_dimension_numbers<[1], [0], [0], [1], [0, 0, 1, 1], [], []>} : vector<16x64xf32>, vector<64x32xf32>, vector<16x32xf32> -> vector<16x32xf32>
    %404 = arith.addf %374, %403 : vector<16x32xf32>
    %405 = vector.extract_strided_slice %214 {offsets = [9, 0], sizes = [1, 32], strides = [1, 1]} : vector<10x32xf32> to vector<1x32xf32>
    %406 = vector.broadcast %405 : vector<1x32xf32> to vector<16x32xf32>
    %407 = arith.addf %404, %406 : vector<16x32xf32>
    %c0_117 = arith.constant 0 : index
    %c0_118 = arith.constant 0 : index
    %408 = vector.load %arg8[%c0_117, %c0_118] : memref<2x32xf32, #tpu.memory_space<vmem>>, vector<2x32xf32>
    %409 = vector.extract_strided_slice %408 {offsets = [0, 0], sizes = [1, 32], strides = [1, 1]} : vector<2x32xf32> to vector<1x32xf32>
    %410 = vector.extract_strided_slice %408 {offsets = [1, 0], sizes = [1, 32], strides = [1, 1]} : vector<2x32xf32> to vector<1x32xf32>
    %cst_119 = arith.constant dense<0.000000e+00> : vector<16xf32>
    %411 = vector.multi_reduction <add>, %407, %cst_119 [1] : vector<16x32xf32> to vector<16xf32>
    %412 = vector.shape_cast %411 : vector<16xf32> to vector<16x1xf32>
    %cst_120 = arith.constant 3.200000e+01 : f32
    %413 = vector.broadcast %cst_120 : f32 to vector<16x1xf32>
    %414 = arith.divf %412, %413 : vector<16x1xf32>
    %415 = vector.broadcast %414 : vector<16x1xf32> to vector<16x32xf32>
    %416 = arith.subf %407, %415 : vector<16x32xf32>
    %417 = arith.mulf %416, %416 : vector<16x32xf32>
    %cst_121 = arith.constant dense<0.000000e+00> : vector<16xf32>
    %418 = vector.multi_reduction <add>, %417, %cst_121 [1] : vector<16x32xf32> to vector<16xf32>
    %419 = vector.shape_cast %418 : vector<16xf32> to vector<16x1xf32>
    %cst_122 = arith.constant 3.200000e+01 : f32
    %420 = vector.broadcast %cst_122 : f32 to vector<16x1xf32>
    %421 = arith.divf %419, %420 : vector<16x1xf32>
    %cst_123 = arith.constant 9.99999974E-6 : f32
    %422 = vector.broadcast %cst_123 : f32 to vector<16x1xf32>
    %423 = arith.addf %421, %422 : vector<16x1xf32>
    %424 = math.rsqrt %423 : vector<16x1xf32>
    %425 = vector.broadcast %424 : vector<16x1xf32> to vector<16x32xf32>
    %426 = arith.mulf %416, %425 : vector<16x32xf32>
    %427 = vector.broadcast %409 : vector<1x32xf32> to vector<16x32xf32>
    %428 = arith.mulf %426, %427 : vector<16x32xf32>
    %429 = vector.broadcast %410 : vector<1x32xf32> to vector<16x32xf32>
    %430 = arith.addf %428, %429 : vector<16x32xf32>
    %c0_124 = arith.constant 0 : index
    %c0_125 = arith.constant 0 : index
    %431 = vector.load %arg9[%c0_124, %c0_125] : memref<16x32xf32, #tpu.memory_space<vmem>>, vector<16x32xf32>
    tpu.vector_store %arg9[%c0_124, %c0_125], %430 {strides = array<i32>} : memref<16x32xf32, #tpu.memory_space<vmem>>, vector<16x32xf32>,
    return
  }
}

</mosaic_0001>

<bundles_post_ra>
// kernel: tpu_custom_call.1
= control target key start
LH: loop header
LB: loop body
LE: loop exit
PB: predicated region body
PF: predicated region fallthrough
CT: control target
= control target key end

     0   :  { %14 = vsyncpa [#allocation3], 0  ;;  %s6213_s0 = inlined_call_operand.hbm [shape: f32[16,32], index: 0, kind: input, shape index: {}]   ;;  %s6214_s1 = inlined_call_operand.hbm [shape: f32[16,32], index: 1, kind: input, shape index: {}]   ;;  %s6215_s2 = inlined_call_operand.vmem [shape: f32[2,1,8], index: 2, kind: input, shape index: {}]   ;;  %s6216_s3 = inlined_call_operand.vmem [shape: f32[2,32,320], index: 3, kind: input, shape index: {}]   ;;  %s6217_s4 = inlined_call_operand.vmem [shape: f32[2,64,32], index: 4, kind: input, shape index: {}]   ;;  %s6218_s5 = inlined_call_operand.vmem [shape: f32[2,10,32], index: 5, kind: input, shape index: {}]   ;;  %s6219_s6 = inlined_call_operand.vmem [shape: f32[2,2,64], index: 6, kind: input, shape index: {}]   ;;  %s6220_s7 = inlined_call_operand.vmem [shape: f32[2,1,96], index: 7, kind: input, shape index: {}]   ;;  %s6221_s8 = inlined_call_operand.vmem [shape: f32[2,32], index: 8, kind: input, shape index: {}]   ;;  %s6222_s9 = inlined_call_operand.hbm [shape: f32[16,32], index: 9, kind: output, shape index: {}]  }
   0x1   :  { %15 = vsyncpa [#allocation6], 0 }
   0x2   :  { %16 = vsyncpa [#allocation4], 0  ;;  %s5362_s30 = smov [#allocation2]   ;;  %s5290_s13 = scalar_lea.hbm %s6213_s0, 256 }
   0x3   :  { %s22_s10 = sshll.u32 %s5362_s30, 4  ;;  %p5291_p0 = scmp.ne.s32.totalorder %s6213_s0, %s5290_s13  ;;  %s23_s10 = int_to_ptr.vmem [resolvable:$true] %s22_s10 }
   0x4   :  { %p5294_p1 = scmp.lt.u32.totalorder %s5290_s13, %s6213_s0 }
   0x6   :  { %p5296_p2 = pnand %p5294_p1, %p5291_p0 }
   0x8   :  { %5299 = shalt.err (!%p5296_p2)
}
   0x9   :  { %s5300_s18 = scalar_lea.vmem %s23_s10, 256  ;;  %p5305_p4 = scmp.lt.s32.totalorder %s23_s10, %s23_s10 }
   0xa   :  { %p5301_p3 = scmp.ne.s32.totalorder %s23_s10, %s5300_s18  ;;  %p5306_p5 = scmp.lt.s32.totalorder %s5300_s18, %s5300_s18 }
   0xc   :  { %p5307_p6 = por %p5306_p5, %p5305_p4 }
   0xe   :  { %p5308_p7 = pnand %p5307_p6, %p5301_p3 }
  0x10   :  { %5311 = shalt.err (!%p5308_p7)
}
  0x11   :  { %s5363_s19 = smov 128   ;;  %s5364_s20 = smov 8  }
  0x12   :  { %28 = dma.hbm_to_vmem [thread:$0]  %s6213_s0, 256, %s23_s10, [#allocation3], %s5363_s19, %s5363_s19, %s5364_s20  }
  0x13   :  { %s5365_s23 = smov [#allocation5]   ;;  %s5312_s27 = scalar_lea.hbm %s6214_s1, 256 }
  0x14   :  { %s34_s24 = sshll.u32 %s5365_s23, 4  ;;  %p5313_p8 = scmp.ne.s32.totalorder %s6214_s1, %s5312_s27  ;;  %s35_s24 = int_to_ptr.vmem [resolvable:$true] %s34_s24 }
  0x15   :  { %p5316_p9 = scmp.lt.u32.totalorder %s5312_s27, %s6214_s1 }
  0x17   :  { %p5318_p10 = pnand %p5316_p9, %p5313_p8 }
  0x19   :  { %5321 = shalt.err (!%p5318_p10)
}
  0x1a   :  { %s5322_s12 = scalar_lea.vmem %s35_s24, 256  ;;  %p5327_p12 = scmp.lt.s32.totalorder %s35_s24, %s35_s24 }
  0x1b   :  { %p5323_p11 = scmp.ne.s32.totalorder %s35_s24, %s5322_s12  ;;  %p5328_p13 = scmp.lt.s32.totalorder %s5322_s12, %s5322_s12 }
  0x1d   :  { %p5329_p0 = por %p5328_p13, %p5327_p12 }
  0x1f   :  { %p5330_p1 = pnand %p5329_p0, %p5323_p11 }
  0x21   :  { %5333 = shalt.err (!%p5330_p1)
}
  0x22   :  { %40 = dma.hbm_to_vmem [thread:$0]  %s6214_s1, 256, %s35_s24, [#allocation6], %s5363_s19, %s5363_s19, %s5364_s20  }
  0x23   :  { %5356 = dma.done.wait [#allocation3], 256  }
  0x24   :  { %5357 = vsyncadd [#allocation3], 4294967040 }
  0x25   :  { %5358 = dma.done.wait [#allocation6], 256  }
  0x26   :  { %5359 = vsyncadd [#allocation6], 4294967040  ;;  %vm101_vm0 = vcmask 261120   ;;  %v5457_v0 = vld [vmem:[#allocation2] sm:$0xff]  ;;  %v5459_v1 = vld [vmem:[#allocation2 + $0x8] sm:$0xff]  ;;  %v65_v23 = vlaneseq  ;;  %v5366_v42 = vmov 0.0  }
  0x27   :  { %v102_v2 = vsel %vm101_vm0, %v5457_v0, 0.0  ;;  %v105_v3 = vsel %vm101_vm0, %v5459_v1, 0.0  ;;  %v5472_v14 = vld [vmem:[%s6216_s3] sm:$0xff]  ;;  %v5477_v15 = vld [vmem:[%s6216_s3 + $0x18] sm:$0xff]  ;;  %v5482_v16 = vld [vmem:[%s6216_s3 + $0x30] sm:$0xff]  ;;  %4685 = vmatprep.subr.mxu0 %v5366_v42  ;;  %vm5367_vm1 = vmmov 0  }
  0x28   :  { %103 = vadd.xlane.f32.xlu0 %v102_v2  ;;  %v5137_v17 = vpack.i.bf16 %v5477_v15, %v5472_v14  ;;  %v4994_v18 = vpack.c.bf16 %v5477_v15, %v5472_v14  ;;  %v5491_v19 = vld [vmem:[%s6216_s3 + $0x48] sm:$0xff]  ;;  %v5495_v27 = vshrl.u32 %v65_v23, 7  ;;  %v5503_v30 = vld [vmem:[%s6218_s5] sm:$0xff]  ;;  %4687 = vmatprep.mubr.msk.f32.mxu0 %vm5367_vm1, %v5366_v42  ;;  %s5368_s26 = smov 96   ;;  %vm231_vm2 = vcmask 130048   ;;  %s5370_s27 = smov 64  }
  0x29   :  { %v4998_v20 = vpack.c.bf16 %v5491_v19, %v5482_v16  ;;  %v4406_v43 = vld [vmem:[%s6220_s7] ss:$0 sm:$0xff]  ;;  %v68_v50 = vand.u32 127, %v65_v23  ;;  %v5369_v51 = vmov -1e+09   ;;  %vm383_vm4 = vcmask 64512  }
  0x2a   :  { %4995 = vmatprep.subr.bf16.mxu1 %v4994_v18  ;;  %v5498_v29 = vsub.s32 0, %v5495_v27  ;;  %v137_v31 = vsub.s32 3, %v5495_v27  ;;  %s5371_s28 = smov 80   ;;  %s5372_s29 = smov 112   ;;  %vm2131_vm7 = vcmask 523264  }
  0x2b   :  { %4997 = vmatpush3.bf16.msra.mxu1 %v4994_v18  ;;  %vm69_vm3 = vcmp.le.s32.totalorder %v68_v50, %v5495_v27  ;;  %s5373_s30 = smov 48   ;;  %s5374_s11 = smov 32  }
  0x2c   :  { %106 = vadd.xlane.f32.xlu0 %v105_v3  ;;  %4999 = vmatprep.subr.bf16.mxu1 %v4998_v20  ;;  %v132_v32 = vrot.slane %v5503_v30, %v5498_v29  ;;  %v138_v35 = vrot.slane %v5503_v30, %v137_v31  ;;  %v5544_v52 = vsel %vm69_vm3, 0.0, %v5369_v51  ;;  %s5375_s12 = smov 16  }
  0x2f   :  { %5001 = vmatpush3.bf16.msra.mxu1 %v4998_v20 }
  0x30   :  { %4675 = vmatprep.subr.mxu1 %v5366_v42 }
  0xb5   :  { %v104_v4 = vpop.xlane.xlu0 %103 }
  0xb6   :  { %v109_v5 = vmul.f32 0.03125, %v104_v4 }
  0xb8   :  { %v111_v6 = vsub.f32 %v5457_v0, %v109_v5 }
  0xb9   :  { %v107_v7 = vpop.xlane.xlu0 %106 }
  0xba   :  { %v110_v8 = vmul.f32 0.03125, %v107_v7  ;;  %v113_v9 = vmul.f32 %v111_v6, %v111_v6 }
  0xbc   :  { %v112_v10 = vsub.f32 %v5459_v1, %v110_v8  ;;  %v115_v11 = vsel %vm101_vm0, %v113_v9, 0.0 }
  0xbd   :  { %116 = vadd.xlane.f32.xlu1 %v115_v11 }
  0xbe   :  { %v114_v12 = vmul.f32 %v112_v10, %v112_v10 }
  0xc0   :  { %v118_v13 = vsel %vm101_vm0, %v114_v12, 0.0 }
  0xc1   :  { %119 = vadd.xlane.f32.xlu1 %v118_v13 }
 0x14a   :  { %v117_v21 = vpop.xlane.xlu1 %116 }
 0x14b   :  { %v121_v22 = vmul.f32 0.03125, %v117_v21 }
 0x14d   :  { %v123_v24 = vadd.f32 1e-05, %v121_v22 }
 0x14e   :  { %v120_v25 = vpop.xlane.xlu1 %119 }
 0x14f   :  { %5197 = vrsqrt.f32 %v123_v24  ;;  %v122_v26 = vmul.f32 0.03125, %v120_v25 }
 0x151   :  { %v124_v28 = vadd.f32 1e-05, %v122_v26 }
 0x153   :  { %5199 = vrsqrt.f32 %v124_v28 }
 0x159   :  { %v5198_v33 = vpop.eup %5197 }
 0x15a   :  { %v127_v34 = vmul.f32 %v5198_v33, %v111_v6 }
 0x15c   :  { %v133_v36 = vmul.f32 %v132_v32, %v127_v34 }
 0x15d   :  { %v5200_v37 = vpop.eup %5199 }
 0x15e   :  { %v128_v38 = vmul.f32 %v5200_v37, %v112_v10  ;;  %v139_v39 = vadd.f32 %v138_v35, %v133_v36 }
 0x160   :  { %v134_v40 = vmul.f32 %v132_v32, %v128_v38  ;;  %4672 = vmatprep.mubr.msk.f32.mxu1 %vm101_vm0, %v139_v39 }
 0x162   :  { %v140_v41 = vadd.f32 %v138_v35, %v134_v40 }
 0x164   :  { %4673 = vmatmul.mubr.msk.f32.vlgmr.msra.gmra.mrb[0].mxu1 %vm101_vm0, %v140_v41 }
 0x165   :  { %4677 = vmatprep.mubr.msk.f32.mxu1 %vm5367_vm1, %v5366_v42 }
 0x237   :  { %v4674_v44 = vpop.f32.mrb[0].mxu1 }
 0x238   :  { %v5522_v45 = vadd.f32 %v4674_v44, %v4406_v43  ;;  %v219_v46 = vpop.f32.mrb[1].mxu1 }
 0x239   :  { %v5524_v47 = vadd.f32 %v4406_v43, %v219_v46 }
 0x23a   :  { %307 = vrot.lane.b32.xlu1 %v5522_v45, %s5368_s26 }
 0x23b   :  { %229 = vrot.lane.b32.xlu0 %v5524_v47, %s5368_s26 }
 0x2ac   :  { %v308_v49 = vpop.permute.xlu1 %307 }
 0x2ad   :  { %v230_v48 = vpop.permute.xlu0 %229 }
 0x2ae   :  { %4676 = vmatpush3.xpose.msk.msra.mxu1 %vm231_vm2, %v230_v48 }
 0x2af   :  { %4680 = vmatprep.subr.mxu1 %v5366_v42 }
 0x2b1   :  { %4678 = vmatmul.mubr.msk.f32.vlgmr.msra.gmra.mrb[2].mxu1 %vm231_vm2, %v5524_v47 }
 0x2b2   :  { %4681 = vmatpush3.xpose.msk.msra.mxu1 %vm231_vm2, %v308_v49  ;;  %4682 = vmatprep.mubr.msk.f32.mxu1 %vm5367_vm1, %v5366_v42  ;;  %v5142_v49 = vpack.i.bf16 %v5491_v19, %v5482_v16 }
 0x2b3   :  { %4690 = vmatprep.subr.mxu1 %v5366_v42 }
 0x2b5   :  { %4683 = vmatmul.mubr.msk.f32.vlgmr.msra.gmra.mrb[4].mxu1 %vm231_vm2, %v5522_v45 }
 0x2b6   :  { %4692 = vmatprep.mubr.msk.f32.mxu1 %vm5367_vm1, %v5366_v42 }
 0x384   :  { %v302_v53 = vpop.f32.mrb[2].mxu1 }
 0x385   :  { %v303_v54 = vadd.f32 %v302_v53, %v5544_v52  ;;  %v4679_v55 = vpop.f32.mrb[3].mxu1 }
 0x387   :  { %v384_v56 = vsel %vm383_vm4, %v303_v54, -inf }
 0x388   :  { %385 = vmax.xlane.f32.xlu1 %v384_v56  ;;  %v379_v57 = vpop.f32.mrb[4].mxu1 }
 0x389   :  { %v380_v58 = vadd.f32 %v379_v57, %v5544_v52  ;;  %v4684_v59 = vpop.f32.mrb[5].mxu1 }
 0x38b   :  { %v387_v60 = vsel %vm383_vm4, %v380_v58, -inf }
 0x38c   :  { %388 = vmax.xlane.f32.xlu0 %v387_v60 }
 0x399   :  { %478 = vrot.lane.b32.xlu1 %v5522_v45, %s5370_s27 }
 0x39d   :  { %560 = vrot.lane.b32.xlu1 %v5524_v47, %s5371_s28 }
 0x3a1   :  { %638 = vrot.lane.b32.xlu1 %v5522_v45, %s5371_s28 }
 0x3a2   :  { %402 = vrot.lane.b32.xlu0 %v5524_v47, %s5370_s27 }
 0x3a5   :  { %636 = vrot.lane.b32.xlu1 %v5522_v45, %s5372_s29 }
 0x3a6   :  { %558 = vrot.lane.b32.xlu0 %v5524_v47, %s5372_s29 }
 0x415   :  { %v386_v61 = vpop.xlane.xlu1 %385 }
 0x416   :  { %v390_v62 = vsub.f32 %v303_v54, %v386_v61 }
 0x418   :  { %v392_v63 = vmul.f32 1.442695, %v390_v62 }
 0x419   :  { %v479_v2 = vpop.permute.xlu1 %478  ;;  %v389_v3 = vpop.xlane.xlu0 %388 }
 0x41a   :  { %5201 = vpow2.f32 %v392_v63  ;;  %v391_v4 = vsub.f32 %v380_v58, %v389_v3  ;;  %4691 = vmatpush3.msra.mxu1 %v479_v2 }
 0x41b   :  { %4700 = vmatprep.subr.mxu1 %v5366_v42 }
 0x41c   :  { %v394_v5 = vmul.f32 1.442695, %v391_v4 }
 0x41d   :  { %v403_v6 = vpop.permute.xlu0 %402  ;;  %v561_v7 = vpop.permute.xlu1 %560 }
 0x41e   :  { %5203 = vpow2.f32 %v394_v5  ;;  %4686 = vmatpush3.msra.mxu0 %v403_v6 }
 0x41f   :  { %4695 = vmatprep.subr.mxu0 %v5366_v42 }
 0x421   :  { %v639_v9 = vpop.permute.xlu1 %638  ;;  %v559_v11 = vpop.permute.xlu0 %558 }
 0x424   :  { %v5202_v8 = vpop.eup %5201 }
 0x425   :  { %4688 = vmatmul.mubr.msk.f32.vlgmr.msra.gmra.mrb[0].mxu0 %vm383_vm4, %v5202_v8  ;;  %v637_v12 = vpop.permute.xlu1 %636  ;;  %v396_v46 = vsel %vm383_vm4, %v5202_v8, 0.0 }
 0x426   :  { %4696 = vmatpush3.xpose.msk.msra.mxu0 %vm231_vm2, %v561_v7  ;;  %4697 = vmatprep.mubr.msk.f32.mxu0 %vm5367_vm1, %v5366_v42 }
 0x427   :  { %4705 = vmatprep.subr.mxu0 %v5366_v42 }
 0x428   :  { %v5204_v10 = vpop.eup %5203 }
 0x429   :  { %4693 = vmatmul.mubr.msk.f32.vlgmr.msra.gmra.mrb[6].mxu1 %vm383_vm4, %v5204_v10  ;;  %4698 = vmatmul.mubr.msk.f32.vlgmr.msra.gmra.mrb[2].mxu0 %vm231_vm2, %v559_v11  ;;  %v399_v48 = vsel %vm383_vm4, %v5204_v10, 0.0 }
 0x42a   :  { %4701 = vmatpush3.xpose.msk.msra.mxu1 %vm231_vm2, %v639_v9  ;;  %4702 = vmatprep.mubr.msk.f32.mxu1 %vm5367_vm1, %v5366_v42 }
 0x42b   :  { %4710 = vmatprep.subr.mxu1 %v5366_v42  ;;  %4707 = vmatprep.mubr.msk.f32.mxu0 %vm5367_vm1, %v5366_v42 }
 0x42d   :  { %4703 = vmatmul.mubr.msk.f32.vlgmr.msra.gmra.mrb[8].mxu1 %vm231_vm2, %v637_v12 }
 0x42e   :  { %4712 = vmatprep.mubr.msk.f32.mxu1 %vm5367_vm1, %v5366_v42 }
 0x4f8   :  { %v474_v13 = vpop.f32.mrb[0].mxu0 }
 0x4f9   :  { %v4689_v18 = vpop.f32.mrb[1].mxu0 }
 0x4fc   :  { %v5580_v20 = vpop.f32.mrb[6].mxu1  ;;  %v632_v21 = vpop.f32.mrb[2].mxu0 }
 0x4fd   :  { %v633_v22 = vadd.f32 %v632_v21, %v5544_v52  ;;  %v4694_v23 = vpop.f32.mrb[7].mxu1  ;;  %v4699_v24 = vpop.f32.mrb[3].mxu0 }
 0x4ff   :  { %v714_v25 = vsel %vm383_vm4, %v633_v22, -inf }
 0x500   :  { %715 = vmax.xlane.f32.xlu0 %v714_v25  ;;  %v710_v26 = vpop.f32.mrb[8].mxu1 }
 0x501   :  { %v711_v28 = vadd.f32 %v710_v26, %v5544_v52  ;;  %v4704_v32 = vpop.f32.mrb[9].mxu1 }
 0x502   :  { %v84_v32 = vld [vmem:[%s6216_s3 + $0x38] sm:$0xff] }
 0x503   :  { %v717_v33 = vsel %vm383_vm4, %v711_v28, -inf }
 0x504   :  { %718 = vmax.xlane.f32.xlu1 %v717_v33 }
 0x515   :  { %808 = vrot.lane.b32.xlu1 %v5522_v45, %s5373_s30 }
 0x516   :  { %732 = vrot.lane.b32.xlu0 %v5524_v47, %s5373_s30 }
 0x58d   :  { %v716_v34 = vpop.xlane.xlu0 %715 }
 0x58e   :  { %v720_v35 = vsub.f32 %v633_v22, %v716_v34 }
 0x590   :  { %v722_v36 = vmul.f32 1.442695, %v720_v35 }
 0x591   :  { %v733_v37 = vpop.permute.xlu0 %732  ;;  %v719_v38 = vpop.xlane.xlu1 %718 }
 0x592   :  { %5205 = vpow2.f32 %v722_v36  ;;  %v721_v39 = vsub.f32 %v711_v28, %v719_v38  ;;  %4706 = vmatpush3.msra.mxu0 %v733_v37 }
 0x594   :  { %v724_v40 = vmul.f32 1.442695, %v721_v39 }
 0x595   :  { %v809_v41 = vpop.permute.xlu1 %808 }
 0x596   :  { %5207 = vpow2.f32 %v724_v40  ;;  %4711 = vmatpush3.msra.mxu1 %v809_v41 }
 0x59c   :  { %v5206_v43 = vpop.eup %5205 }
 0x59d   :  { %4708 = vmatmul.mubr.msk.f32.vlgmr.msra.gmra.mrb[4].mxu0 %vm383_vm4, %v5206_v43  ;;  %v726_v44 = vsel %vm383_vm4, %v5206_v43, 0.0 }
 0x59e   :  { %727 = vadd.xlane.f32.xlu0 %v726_v44  ;;  %v78_v44 = vld [vmem:[%s6216_s3 + $0x8] sm:$0xff] }
 0x5a0   :  { %v5208_v45 = vpop.eup %5207 }
 0x5a1   :  { %4713 = vmatmul.mubr.msk.f32.vlgmr.msra.gmra.mrb[10].mxu1 %vm383_vm4, %v5208_v45  ;;  %v729_v47 = vsel %vm383_vm4, %v5208_v45, 0.0  ;;  %v81_v45 = vld [vmem:[%s6216_s3 + $0x20] sm:$0xff] }
 0x5a2   :  { %397 = vadd.xlane.f32.xlu0 %v396_v46  ;;  %730 = vadd.xlane.f32.xlu1 %v729_v47  ;;  %v5644_v46 = vpack.i.bf16 %v81_v45, %v78_v44  ;;  %v5010_v47 = vpack.c.bf16 %v81_v45, %v78_v44 }
 0x5a4   :  { %5011 = vmatprep.subr.bf16.mxu1 %v5010_v47 }
 0x5a5   :  { %5013 = vmatpush3.bf16.msra.mxu1 %v5010_v47 }
 0x5a6   :  { %400 = vadd.xlane.f32.xlu0 %v399_v48  ;;  %v5648_v48 = vld [vmem:[#allocation5] sm:$0xff] }
 0x5b3   :  { %5143 = vrot.lane.b32.xlu1 %v5142_v49, %s5374_s11 }
 0x5bc   :  { %5138 = vrot.lane.b32.xlu0 %v5137_v17, %s5374_s11 }
 0x62b   :  { %v728_v50 = vpop.xlane.xlu0 %727 }
 0x62f   :  { %v398_v53 = vpop.xlane.xlu0 %397  ;;  %v731_v54 = vpop.xlane.xlu1 %730 }
 0x630   :  { %5209 = vrcp.f32 %v398_v53 }
 0x633   :  { %v401_v55 = vpop.xlane.xlu0 %400  ;;  %v5144_v56 = vpop.permute.xlu1 %5143 }
 0x634   :  { %5211 = vrcp.f32 %v401_v55  ;;  %v5146_v57 = vunpack.i.h.bf16 %v5144_v56  ;;  %v5145_v58 = vunpack.i.l.bf16 %v5144_v56 }
 0x635   :  { %5213 = vrcp.f32 %v728_v50 }
 0x636   :  { %v5006_v62 = vpack.c.bf16 %v5146_v57, %v5145_v58  ;;  %5215 = vrcp.f32 %v731_v54 }
 0x637   :  { %v5139_v59 = vpop.permute.xlu0 %5138 }
 0x638   :  { %v5141_v60 = vunpack.i.h.bf16 %v5139_v59  ;;  %v5140_v16 = vunpack.i.l.bf16 %v5139_v59 }
 0x63a   :  { %v5210_v19 = vpop.eup %5209  ;;  %v5002_v61 = vpack.c.bf16 %v5141_v60, %v5140_v16 }
 0x63b   :  { %v556_v63 = vmul.f32 %v5210_v19, %v474_v13  ;;  %v999_v13 = vsub.s32 6, %v5495_v27 }
 0x63c   :  { %5003 = vmatprep.subr.bf16.mxu0 %v5002_v61 }
 0x63d   :  { %5005 = vmatpush3.bf16.msra.mxu0 %v5002_v61  ;;  %v1000_v18 = vrot.slane %v5503_v30, %v999_v13 }
 0x63e   :  { %v5212_v14 = vpop.eup %5211  ;;  %5007 = vmatprep.subr.bf16.mxu0 %v5006_v62 }
 0x63f   :  { %v557_v15 = vmul.f32 %v5212_v14, %v5580_v20  ;;  %v5214_v17 = vpop.eup %5213  ;;  %v5654_v14 = vsub.s32 1, %v5495_v27 }
 0x640   :  { %v5216_v5 = vpop.eup %5215 }
 0x641   :  { %5009 = vmatpush3.bf16.msra.mxu0 %v5006_v62 }
 0x670   :  { %v804_v2 = vpop.f32.mrb[4].mxu0 }
 0x671   :  { %v886_v3 = vmul.f32 %v5214_v17, %v804_v2  ;;  %v4709_v4 = vpop.f32.mrb[5].mxu0  ;;  %v1032_v2 = vrot.slane %v5503_v30, %v5654_v14 }
 0x672   :  { %v64_v4 = vld [vmem:[#allocation5 + $0x8] sm:$0xff] }
 0x673   :  { %890 = vrot.lane.b32.xlu1 %v886_v3, %s5375_s12  ;;  %v1037_v3 = vsub.s32 4, %v5495_v27 }
 0x674   :  { %v880_v6 = vpop.f32.mrb[10].mxu1 }
 0x675   :  { %v887_v7 = vmul.f32 %v5216_v5, %v880_v6  ;;  %v4714_v8 = vpop.f32.mrb[11].mxu1 }
 0x676   :  { %v1038_v8 = vrot.slane %v5503_v30, %v1037_v3 }
 0x677   :  { %892 = vrot.lane.b32.xlu1 %v887_v7, %s5375_s12 }
 0x6e5   :  { %v891_v9 = vpop.permute.xlu1 %890 }
 0x6e6   :  { %v896_v10 = vsel %vm231_vm2, %v556_v63, %v891_v9 }
 0x6e7   :  { %4723 = vmatprep.mubr.msk.f32.mxu0 %vm101_vm0, %v896_v10 }
 0x6e9   :  { %v893_v11 = vpop.permute.xlu1 %892 }
 0x6ea   :  { %v897_v12 = vsel %vm231_vm2, %v557_v15, %v893_v11 }
 0x6eb   :  { %4724 = vmatmul.mubr.msk.f32.vlgmr.msra.gmra.mrb[6].mxu0 %vm101_vm0, %v897_v12  ;;  %v5673_v12 = vld [vmem:[%s6219_s6] sm:$0x3] }
 0x6ec   :  { %4745 = vmatprep.mubr.msk.f32.mxu0 %vm101_vm0, %v5648_v48 }
 0x7be   :  { %v4725_v20 = vpop.f32.mrb[6].mxu0 }
 0x7bf   :  { %v996_v21 = vadd.f32 %v4725_v20, %v5459_v1  ;;  %v986_v22 = vpop.f32.mrb[7].mxu0 }
 0x7c0   :  { %v995_v23 = vadd.f32 %v986_v22, %v5457_v0  ;;  %v87_v0 = vld [vmem:[%s6216_s3 + $0x50] sm:$0xff] }
 0x7c1   :  { %v5616_v24 = vadd.f32 %v1000_v18, %v996_v21  ;;  %v5630_v1 = vpack.i.bf16 %v87_v0, %v84_v32  ;;  %v5014_v49 = vpack.c.bf16 %v87_v0, %v84_v32  ;;  %v1043_v21 = vsub.s32 7, %v5495_v27 }
 0x7c2   :  { %v5618_v25 = vadd.f32 %v1000_v18, %v995_v23  ;;  %v1129_v18 = vrot.slane %v5673_v12, %v5498_v29 }
 0x7c3   :  { %v1006_v26 = vsel %vm101_vm0, %v5616_v24, 0.0  ;;  %5015 = vmatprep.subr.bf16.mxu1 %v5014_v49 }
 0x7c4   :  { %1007 = vadd.xlane.f32.xlu1 %v1006_v26  ;;  %v1003_v28 = vsel %vm101_vm0, %v5618_v25, 0.0  ;;  %5017 = vmatpush3.bf16.msra.mxu1 %v5014_v49  ;;  %v1044_v26 = vrot.slane %v5503_v30, %v1043_v21 }
 0x7c5   :  { %1004 = vadd.xlane.f32.xlu0 %v1003_v28  ;;  %4748 = vmatprep.subr.mxu1 %v5366_v42 }
 0x7d5   :  { %5153 = vrot.lane.b32.xlu1 %v5630_v1, %s5368_s26 }
 0x851   :  { %v1008_v33 = vpop.xlane.xlu1 %1007 }
 0x852   :  { %v1010_v34 = vmul.f32 0.03125, %v1008_v33  ;;  %v1005_v35 = vpop.xlane.xlu0 %1004 }
 0x853   :  { %v1009_v36 = vmul.f32 0.03125, %v1005_v35  ;;  %v71_v35 = vld [vmem:[%s6215_s2] sm:$0x1] }
 0x854   :  { %v1012_v37 = vsub.f32 %v5616_v24, %v1010_v34  ;;  %vm73_vm5 = vcmp.gt.f32.partialorder %v71_v35, 0.5 }
 0x855   :  { %v1011_v38 = vsub.f32 %v5618_v25, %v1009_v36  ;;  %v5154_v56 = vpop.permute.xlu1 %5153  ;;  %v72_v36 = vld [vmem:[%s6215_s2 + $0x1] sm:$0x1] }
 0x856   :  { %v1014_v39 = vmul.f32 %v1012_v37, %v1012_v37  ;;  %v5156_v59 = vunpack.i.h.bf16 %v5154_v56  ;;  %v5155_v60 = vunpack.i.l.bf16 %v5154_v56  ;;  %vm74_vm6 = vcmp.gt.f32.partialorder %v72_v36, 0.5 }
 0x857   :  { %v1013_v41 = vmul.f32 %v1011_v38, %v1011_v38 }
 0x858   :  { %v1018_v40 = vsel %vm101_vm0, %v1014_v39, 0.0  ;;  %v5022_v63 = vpack.c.bf16 %v5156_v59, %v5155_v60  ;;  %v76_v39 = vsel %vm74_vm6, 0.0, %v5369_v51 }
 0x859   :  { %1019 = vadd.xlane.f32.xlu0 %v1018_v40  ;;  %v1015_v43 = vsel %vm101_vm0, %v1013_v41, 0.0  ;;  %v5710_v44 = vrot.slane %v76_v39, %v5498_v29 }
 0x85d   :  { %1016 = vadd.xlane.f32.xlu0 %v1015_v43 }
 0x873   :  { %5148 = vrot.lane.b32.xlu0 %v5644_v46, %s5368_s26 }
 0x8e6   :  { %v1020_v50 = vpop.xlane.xlu0 %1019 }
 0x8e7   :  { %v1022_v53 = vmul.f32 0.03125, %v1020_v50 }
 0x8e9   :  { %v1024_v54 = vadd.f32 1e-05, %v1022_v53 }
 0x8ea   :  { %v1017_v55 = vpop.xlane.xlu0 %1016 }
 0x8eb   :  { %5217 = vrsqrt.f32 %v1024_v54  ;;  %v1021_v57 = vmul.f32 0.03125, %v1017_v55 }
 0x8ed   :  { %v1023_v58 = vadd.f32 1e-05, %v1021_v57 }
 0x8ee   :  { %v5149_v16 = vpop.permute.xlu0 %5148 }
 0x8ef   :  { %5219 = vrsqrt.f32 %v1023_v58  ;;  %v5151_v19 = vunpack.i.h.bf16 %v5149_v16  ;;  %v5150_v61 = vunpack.i.l.bf16 %v5149_v16 }
 0x8f1   :  { %v5018_v62 = vpack.c.bf16 %v5151_v19, %v5150_v61 }
 0x8f3   :  { %5019 = vmatprep.subr.bf16.mxu0 %v5018_v62 }
 0x8f4   :  { %5021 = vmatpush3.bf16.msra.mxu0 %v5018_v62 }
 0x8f5   :  { %v5218_v15 = vpop.eup %5217  ;;  %5023 = vmatprep.subr.bf16.mxu0 %v5022_v63 }
 0x8f6   :  { %v1028_v17 = vmul.f32 %v5218_v15, %v1012_v37  ;;  %v75_v37 = vsel %vm73_vm5, 0.0, %v5369_v51 }
 0x8f8   :  { %5025 = vmatpush3.bf16.msra.mxu0 %v5022_v63  ;;  %v1034_v7 = vmul.f32 %v1032_v2, %v1028_v17 }
 0x8f9   :  { %v5220_v5 = vpop.eup %5219  ;;  %4758 = vmatprep.subr.mxu0 %v5366_v42 }
 0x8fa   :  { %v1027_v6 = vmul.f32 %v5220_v5, %v1011_v38  ;;  %v1040_v11 = vadd.f32 %v1038_v8, %v1034_v7  ;;  %v5705_v38 = vrot.slane %v75_v37, %v5498_v29 }
 0x8fb   :  { %4746 = vmatmul.mubr.msk.f32.vlgmr.msra.gmra.mrb[8].mxu0 %vm101_vm0, %v64_v4 }
 0x8fc   :  { %v1033_v9 = vmul.f32 %v1032_v2, %v1027_v6  ;;  %4760 = vmatprep.mubr.msk.f32.mxu0 %vm5367_vm1, %v5366_v42 }
 0x8fe   :  { %v1039_v10 = vadd.f32 %v1038_v8, %v1033_v9 }
 0x900   :  { %4734 = vmatprep.mubr.msk.f32.mxu1 %vm101_vm0, %v1039_v10 }
 0x901   :  { %4735 = vmatmul.mubr.msk.f32.vlgmr.msra.gmra.mrb[12].mxu1 %vm101_vm0, %v1040_v11 }
 0x902   :  { %4750 = vmatprep.mubr.msk.f32.mxu1 %vm5367_vm1, %v5366_v42 }
 0x9ce   :  { %v4747_v20 = vpop.f32.mrb[8].mxu0 }
 0x9cf   :  { %v1218_v22 = vpop.f32.mrb[9].mxu0  ;;  %v5686_v33 = vadd.f32 %v4747_v20, %v1129_v18 }
 0x9d0   :  { %v5678_v23 = vadd.f32 %v1218_v22, %v1129_v18 }
 0x9d2   :  { %4749 = vmatpush3.xpose.msk.msra.mxu1 %vm231_vm2, %v5678_v23 }
 0x9d3   :  { %4753 = vmatprep.subr.mxu1 %v5366_v42 }
 0x9d4   :  { %v4736_v28 = vpop.f32.mrb[12].mxu1 }
 0x9d5   :  { %v1117_v32 = vpop.f32.mrb[13].mxu1  ;;  %v1123_v34 = vadd.f32 %v4736_v28, %v1044_v26 }
 0x9d6   :  { %v1118_v0 = vadd.f32 %v1117_v32, %v1044_v26 }
 0x9d8   :  { %4751 = vmatmul.mubr.msk.f32.vlgmr.msra.gmra.mrb[14].mxu1 %vm231_vm2, %v1118_v0 }
 0x9d9   :  { %4754 = vmatpush3.xpose.msk.msra.mxu1 %vm231_vm2, %v5686_v33  ;;  %4755 = vmatprep.mubr.msk.f32.mxu1 %vm5367_vm1, %v5366_v42 }
 0x9da   :  { %4763 = vmatprep.subr.mxu1 %v5366_v42 }
 0x9dc   :  { %4756 = vmatmul.mubr.msk.f32.vlgmr.msra.gmra.mrb[16].mxu1 %vm231_vm2, %v1123_v34 }
 0x9dd   :  { %4765 = vmatprep.mubr.msk.f32.mxu1 %vm5367_vm1, %v5366_v42 }
 0xaab   :  { %v1311_v40 = vpop.f32.mrb[14].mxu1 }
 0xaac   :  { %v1312_v41 = vadd.f32 %v1311_v40, %v5705_v38  ;;  %v4752_v43 = vpop.f32.mrb[15].mxu1 }
 0xaae   :  { %v1391_v45 = vsel %vm383_vm4, %v1312_v41, -inf }
 0xaaf   :  { %1392 = vmax.xlane.f32.xlu1 %v1391_v45  ;;  %v1387_v47 = vpop.f32.mrb[16].mxu1 }
 0xab0   :  { %v1388_v49 = vadd.f32 %v1387_v47, %v5710_v44  ;;  %v4757_v50 = vpop.f32.mrb[17].mxu1 }
 0xab2   :  { %v1394_v53 = vsel %vm383_vm4, %v1388_v49, -inf }
 0xab3   :  { %1395 = vmax.xlane.f32.xlu0 %v1394_v53 }
 0xac0   :  { %1485 = vrot.lane.b32.xlu1 %v5686_v33, %s5368_s26 }
 0xac4   :  { %1567 = vrot.lane.b32.xlu1 %v5678_v23, %s5372_s29 }
 0xac8   :  { %1645 = vrot.lane.b32.xlu1 %v5686_v33, %s5372_s29 }
 0xac9   :  { %1409 = vrot.lane.b32.xlu0 %v5678_v23, %s5368_s26 }
 0xacc   :  { %1643 = vrot.lane.b32.xlu1 %v1123_v34, %s5372_s29 }
 0xacd   :  { %1565 = vrot.lane.b32.xlu0 %v1118_v0, %s5372_s29 }
 0xb3c   :  { %v1393_v51 = vpop.xlane.xlu1 %1392 }
 0xb3d   :  { %v1397_v54 = vsub.f32 %v1312_v41, %v1393_v51 }
 0xb3f   :  { %v1399_v55 = vmul.f32 1.442695, %v1397_v54 }
 0xb40   :  { %v1486_v56 = vpop.permute.xlu1 %1485  ;;  %v1396_v57 = vpop.xlane.xlu0 %1395 }
 0xb41   :  { %5221 = vpow2.f32 %v1399_v55  ;;  %v1398_v58 = vsub.f32 %v1388_v49, %v1396_v57  ;;  %4764 = vmatpush3.msra.mxu1 %v1486_v56 }
 0xb42   :  { %4773 = vmatprep.subr.mxu1 %v5366_v42 }
 0xb43   :  { %v1401_v59 = vmul.f32 1.442695, %v1398_v58 }
 0xb44   :  { %v1410_v60 = vpop.permute.xlu0 %1409  ;;  %v1568_v16 = vpop.permute.xlu1 %1567 }
 0xb45   :  { %5223 = vpow2.f32 %v1401_v59  ;;  %4759 = vmatpush3.msra.mxu0 %v1410_v60 }
 0xb46   :  { %4768 = vmatprep.subr.mxu0 %v5366_v42 }
 0xb48   :  { %v1646_v61 = vpop.permute.xlu1 %1645  ;;  %v1566_v63 = vpop.permute.xlu0 %1565 }
 0xb4b   :  { %v5222_v19 = vpop.eup %5221 }
 0xb4c   :  { %4761 = vmatmul.mubr.msk.f32.vlgmr.msra.gmra.mrb[10].mxu0 %vm383_vm4, %v5222_v19  ;;  %v1644_v15 = vpop.permute.xlu1 %1643 }
 0xb4d   :  { %4769 = vmatpush3.xpose.msk.msra.mxu0 %vm231_vm2, %v1568_v16  ;;  %4770 = vmatprep.mubr.msk.f32.mxu0 %vm5367_vm1, %v5366_v42 }
 0xb4e   :  { %4778 = vmatprep.subr.mxu0 %v5366_v42 }
 0xb4f   :  { %v5224_v62 = vpop.eup %5223 }
 0xb50   :  { %4766 = vmatmul.mubr.msk.f32.vlgmr.msra.gmra.mrb[18].mxu1 %vm383_vm4, %v5224_v62  ;;  %4771 = vmatmul.mubr.msk.f32.vlgmr.msra.gmra.mrb[12].mxu0 %vm231_vm2, %v1566_v63  ;;  %v1406_v41 = vsel %vm383_vm4, %v5224_v62, 0.0 }
 0xb51   :  { %4774 = vmatpush3.xpose.msk.msra.mxu1 %vm231_vm2, %v1646_v61  ;;  %4775 = vmatprep.mubr.msk.f32.mxu1 %vm5367_vm1, %v5366_v42 }
 0xb52   :  { %4783 = vmatprep.subr.mxu1 %v5366_v42  ;;  %4780 = vmatprep.mubr.msk.f32.mxu0 %vm5367_vm1, %v5366_v42 }
 0xb54   :  { %4776 = vmatmul.mubr.msk.f32.vlgmr.msra.gmra.mrb[20].mxu1 %vm231_vm2, %v1644_v15 }
 0xb55   :  { %4785 = vmatprep.mubr.msk.f32.mxu1 %vm5367_vm1, %v5366_v42 }
 0xc1f   :  { %v1481_v17 = vpop.f32.mrb[10].mxu0 }
 0xc20   :  { %v4762_v2 = vpop.f32.mrb[11].mxu0 }
 0xc23   :  { %v1557_v4 = vpop.f32.mrb[18].mxu1  ;;  %v1639_v5 = vpop.f32.mrb[12].mxu0 }
 0xc24   :  { %v1640_v6 = vadd.f32 %v1639_v5, %v5705_v38  ;;  %v4767_v7 = vpop.f32.mrb[19].mxu1  ;;  %v4772_v8 = vpop.f32.mrb[13].mxu0 }
 0xc25   :  { %v5770_v8 = vld [vmem:[%s6218_s5 + $0x8] sm:$0x3] }
 0xc26   :  { %v1721_v9 = vsel %vm383_vm4, %v1640_v6, -inf }
 0xc27   :  { %1722 = vmax.xlane.f32.xlu0 %v1721_v9  ;;  %v1717_v10 = vpop.f32.mrb[20].mxu1  ;;  %v2003_v9 = vrot.slane %v5770_v8, %v5498_v29 }
 0xc28   :  { %v1718_v11 = vadd.f32 %v1717_v10, %v5710_v44  ;;  %v4777_v18 = vpop.f32.mrb[21].mxu1 }
 0xc2a   :  { %v1724_v20 = vsel %vm383_vm4, %v1718_v11, -inf }
 0xc2b   :  { %1725 = vmax.xlane.f32.xlu1 %v1724_v20 }
 0xc3c   :  { %1815 = vrot.lane.b32.xlu1 %v5686_v33, %s5371_s28 }
 0xc3d   :  { %1739 = vrot.lane.b32.xlu0 %v5678_v23, %s5371_s28  ;;  %v1403_v23 = vsel %vm383_vm4, %v5222_v19, 0.0 }
 0xcb4   :  { %v1723_v22 = vpop.xlane.xlu0 %1722 }
 0xcb5   :  { %v1727_v26 = vsub.f32 %v1640_v6, %v1723_v22 }
 0xcb7   :  { %v1729_v28 = vmul.f32 1.442695, %v1727_v26 }
 0xcb8   :  { %v1740_v32 = vpop.permute.xlu0 %1739  ;;  %v1726_v0 = vpop.xlane.xlu1 %1725 }
 0xcb9   :  { %5225 = vpow2.f32 %v1729_v28  ;;  %v1728_v34 = vsub.f32 %v1718_v11, %v1726_v0  ;;  %4779 = vmatpush3.msra.mxu0 %v1740_v32 }
 0xcbb   :  { %v1731_v35 = vmul.f32 1.442695, %v1728_v34 }
 0xcbc   :  { %v1816_v36 = vpop.permute.xlu1 %1815 }
 0xcbd   :  { %5227 = vpow2.f32 %v1731_v35  ;;  %4784 = vmatpush3.msra.mxu1 %v1816_v36 }
 0xcc3   :  { %v5226_v37 = vpop.eup %5225 }
 0xcc4   :  { %4781 = vmatmul.mubr.msk.f32.vlgmr.msra.gmra.mrb[14].mxu0 %vm383_vm4, %v5226_v37  ;;  %v1733_v33 = vsel %vm383_vm4, %v5226_v37, 0.0 }
 0xcc5   :  { %1734 = vadd.xlane.f32.xlu0 %v1733_v33 }
 0xcc7   :  { %v5228_v39 = vpop.eup %5227 }
 0xcc8   :  { %4786 = vmatmul.mubr.msk.f32.vlgmr.msra.gmra.mrb[22].mxu1 %vm383_vm4, %v5228_v39  ;;  %v1736_v40 = vsel %vm383_vm4, %v5228_v39, 0.0 }
 0xcc9   :  { %1404 = vadd.xlane.f32.xlu0 %v1403_v23  ;;  %1737 = vadd.xlane.f32.xlu1 %v1736_v40  ;;  %v79_v40 = vld [vmem:[%s6216_s3 + $0x10] sm:$0xff] }
 0xccd   :  { %1407 = vadd.xlane.f32.xlu0 %v1406_v41  ;;  %v82_v41 = vld [vmem:[%s6216_s3 + $0x28] sm:$0xff] }
 0xcda   :  { %5163 = vrot.lane.b32.xlu1 %v5630_v1, %s5374_s11 }
 0xce3   :  { %5158 = vrot.lane.b32.xlu0 %v5644_v46, %s5374_s11 }
 0xd52   :  { %v1735_v43 = vpop.xlane.xlu0 %1734 }
 0xd56   :  { %v1405_v45 = vpop.xlane.xlu0 %1404  ;;  %v1738_v47 = vpop.xlane.xlu1 %1737 }
 0xd57   :  { %5229 = vrcp.f32 %v1405_v45  ;;  %v85_v45 = vld [vmem:[%s6216_s3 + $0x40] sm:$0xff] }
 0xd5a   :  { %v1408_v49 = vpop.xlane.xlu0 %1407  ;;  %v5164_v50 = vpop.permute.xlu1 %5163 }
 0xd5b   :  { %5231 = vrcp.f32 %v1408_v49  ;;  %v5166_v53 = vunpack.i.h.bf16 %v5164_v50  ;;  %v5165_v51 = vunpack.i.l.bf16 %v5164_v50  ;;  %v93_v50 = vld [vmem:[%s6217_s4] sm:$0xff] }
 0xd5c   :  { %5233 = vrcp.f32 %v1735_v43  ;;  %v5034_v43 = vpack.c.bf16 %v82_v41, %v79_v40 }
 0xd5d   :  { %v5030_v59 = vpack.c.bf16 %v5166_v53, %v5165_v51  ;;  %5235 = vrcp.f32 %v1738_v47  ;;  %v88_v47 = vld [vmem:[%s6216_s3 + $0x58] sm:$0xff]  ;;  %v94_v53 = vld [vmem:[%s6217_s4 + $0x8] sm:$0xff]  ;;  %v95_v51 = vld [vmem:[%s6217_s4 + $0x10] sm:$0xff] }
 0xd5e   :  { %v5159_v54 = vpop.permute.xlu0 %5158  ;;  %5035 = vmatprep.subr.bf16.mxu1 %v5034_v43  ;;  %v5038_v49 = vpack.c.bf16 %v88_v47, %v85_v45 }
 0xd5f   :  { %v5161_v55 = vunpack.i.h.bf16 %v5159_v54  ;;  %v5160_v56 = vunpack.i.l.bf16 %v5159_v54  ;;  %5037 = vmatpush3.bf16.msra.mxu1 %v5034_v43  ;;  %v5042_v54 = vpack.c.bf16 %v94_v53, %v93_v50 }
 0xd60   :  { %5039 = vmatprep.subr.bf16.mxu1 %v5038_v49 }
 0xd61   :  { %v5230_v57 = vpop.eup %5229  ;;  %v5026_v58 = vpack.c.bf16 %v5161_v55, %v5160_v56  ;;  %v96_v55 = vld [vmem:[%s6217_s4 + $0x18] sm:$0xff] }
 0xd62   :  { %v1563_v60 = vmul.f32 %v5230_v57, %v1481_v17  ;;  %v5046_v56 = vpack.c.bf16 %v96_v55, %v95_v51  ;;  %v97_v57 = vld [vmem:[%s6217_s4 + $0x20] sm:$0xff] }
 0xd63   :  { %5027 = vmatprep.subr.bf16.mxu0 %v5026_v58  ;;  %5041 = vmatpush3.bf16.msra.mxu1 %v5038_v49  ;;  %v5860_v55 = vld [vmem:[%s6216_s3 + $0x60] sm:$0xff] }
 0xd64   :  { %5029 = vmatpush3.bf16.msra.mxu0 %v5026_v58  ;;  %v98_v58 = vld [vmem:[%s6217_s4 + $0x28] sm:$0xff] }
 0xd65   :  { %v5232_v1 = vpop.eup %5231  ;;  %5031 = vmatprep.subr.bf16.mxu0 %v5030_v59 }
 0xd66   :  { %v1564_v46 = vmul.f32 %v5232_v1, %v1557_v4  ;;  %v5234_v16 = vpop.eup %5233 }
 0xd67   :  { %v5236_v63 = vpop.eup %5235 }
 0xd68   :  { %5033 = vmatpush3.bf16.msra.mxu0 %v5030_v59  ;;  %v5050_v59 = vpack.c.bf16 %v98_v58, %v97_v57  ;;  %v5872_v58 = vld [vmem:[%s6216_s3 + $0x90] sm:$0xff] }
 0xd69   :  { %5043 = vmatprep.subr.bf16.mxu0 %v5042_v54 }
 0xd97   :  { %v1811_v19 = vpop.f32.mrb[14].mxu0 }
 0xd98   :  { %v1893_v61 = vmul.f32 %v5234_v16, %v1811_v19  ;;  %v4782_v62 = vpop.f32.mrb[15].mxu0 }
 0xd99   :  { %v2034_v62 = vsub.s32 2, %v5495_v27 }
 0xd9a   :  { %1897 = vrot.lane.b32.xlu1 %v1893_v61, %s5375_s12 }
 0xd9b   :  { %v1887_v15 = vpop.f32.mrb[22].mxu1 }
 0xd9c   :  { %v1894_v2 = vmul.f32 %v5236_v63, %v1887_v15  ;;  %v4787_v5 = vpop.f32.mrb[23].mxu1  ;;  %v2040_v63 = vsub.s32 5, %v5495_v27  ;;  %v2035_v15 = vrot.slane %v5503_v30, %v2034_v62  ;;  %v4468_v27 = vld [vmem:[%s6217_s4 + $0x78] sm:$0xff] }
 0xd9e   :  { %1899 = vrot.lane.b32.xlu1 %v1894_v2, %s5375_s12 }
 0xe0c   :  { %v1898_v17 = vpop.permute.xlu1 %1897 }
 0xe0d   :  { %v1903_v6 = vsel %vm231_vm2, %v1563_v60, %v1898_v17  ;;  %v2041_v17 = vrot.slane %v5503_v30, %v2040_v63  ;;  %v2047_v30 = vrot.slane %v5673_v12, %v5654_v14 }
 0xe0e   :  { %4796 = vmatprep.mubr.msk.f32.mxu0 %vm101_vm0, %v1903_v6 }
 0xe10   :  { %v1900_v4 = vpop.permute.xlu1 %1899 }
 0xe11   :  { %v1904_v7 = vsel %vm231_vm2, %v1564_v46, %v1900_v4 }
 0xe12   :  { %4797 = vmatmul.mubr.msk.f32.vlgmr.msra.gmra.mrb[16].mxu0 %vm101_vm0, %v1904_v7 }
 0xe13   :  { %5045 = vmatpush3.bf16.msra.mxu0 %v5042_v54 }
 0xe14   :  { %5047 = vmatprep.subr.bf16.mxu0 %v5046_v56 }
 0xe17   :  { %5049 = vmatpush3.bf16.msra.mxu0 %v5046_v56  ;;  %v5865_v56 = vld [vmem:[%s6216_s3 + $0x78] sm:$0xff] }
 0xe18   :  { %5051 = vmatprep.subr.bf16.mxu0 %v5050_v59  ;;  %v5058_v57 = vpack.c.bf16 %v5865_v56, %v5860_v55 }
 0xe1a   :  { %5059 = vmatprep.subr.bf16.mxu1 %v5058_v57 }
 0xe1b   :  { %5053 = vmatpush3.bf16.msra.mxu0 %v5050_v59  ;;  %v5877_v59 = vld [vmem:[%s6216_s3 + $0xa8] sm:$0xff] }
 0xee5   :  { %v4798_v10 = vpop.f32.mrb[16].mxu0 }
 0xee6   :  { %v1999_v11 = vadd.f32 %v4798_v10, %v5616_v24  ;;  %v1989_v18 = vpop.f32.mrb[17].mxu0 }
 0xee7   :  { %v1998_v20 = vadd.f32 %v1989_v18, %v5618_v25  ;;  %v99_v18 = vld [vmem:[%s6217_s4 + $0x30] sm:$0xff] }
 0xee8   :  { %v5776_v22 = vadd.f32 %v2003_v9, %v1999_v11 }
 0xee9   :  { %v5778_v26 = vadd.f32 %v2003_v9, %v1998_v20  ;;  %v100_v20 = vld [vmem:[%s6217_s4 + $0x38] sm:$0xff] }
 0xeea   :  { %v2009_v28 = vsel %vm101_vm0, %v5776_v22, 0.0 }
 0xeeb   :  { %2010 = vadd.xlane.f32.xlu1 %v2009_v28  ;;  %v2006_v32 = vsel %vm101_vm0, %v5778_v26, 0.0  ;;  %v5054_v28 = vpack.c.bf16 %v100_v20, %v99_v18 }
 0xeec   :  { %2007 = vadd.xlane.f32.xlu0 %v2006_v32 }
 0xeed   :  { %5055 = vmatprep.subr.bf16.mxu0 %v5054_v28 }
 0xeee   :  { %5057 = vmatpush3.bf16.msra.mxu0 %v5054_v28  ;;  %v4469_v28 = vld [vmem:[%s6220_s7 + $0x1] ss:$0 sm:$0xff] }
 0xeef   :  { %4850 = vmatprep.subr.mxu0 %v5366_v42 }
 0xf78   :  { %v2011_v0 = vpop.xlane.xlu1 %2010 }
 0xf79   :  { %v2013_v34 = vmul.f32 0.03125, %v2011_v0  ;;  %v2008_v35 = vpop.xlane.xlu0 %2007 }
 0xf7a   :  { %v2012_v36 = vmul.f32 0.03125, %v2008_v35 }
 0xf7b   :  { %v2015_v24 = vsub.f32 %v5776_v22, %v2013_v34 }
 0xf7c   :  { %v2014_v25 = vsub.f32 %v5778_v26, %v2012_v36 }
 0xf7d   :  { %v2017_v39 = vmul.f32 %v2015_v24, %v2015_v24 }
 0xf7e   :  { %v2016_v37 = vmul.f32 %v2014_v25, %v2014_v25 }
 0xf7f   :  { %v2021_v23 = vsel %vm101_vm0, %v2017_v39, 0.0 }
 0xf80   :  { %v2018_v33 = vsel %vm101_vm0, %v2016_v37, 0.0 }
 0xf81   :  { %2019 = vadd.xlane.f32.xlu0 %v2018_v33 }
 0xf85   :  { %2022 = vadd.xlane.f32.xlu0 %v2021_v23 }
0x100e   :  { %v2020_v60 = vpop.xlane.xlu0 %2019 }
0x100f   :  { %v2024_v1 = vmul.f32 0.03125, %v2020_v60  ;;  %v5062_v60 = vpack.c.bf16 %v5877_v59, %v5872_v58 }
0x1011   :  { %v2026_v46 = vadd.f32 1e-05, %v2024_v1 }
0x1012   :  { %v2023_v16 = vpop.xlane.xlu0 %2022 }
0x1013   :  { %5237 = vrsqrt.f32 %v2026_v46  ;;  %v2025_v19 = vmul.f32 0.03125, %v2023_v16 }
0x1015   :  { %v2027_v61 = vadd.f32 1e-05, %v2025_v19 }
0x1017   :  { %5239 = vrsqrt.f32 %v2027_v61 }
0x101d   :  { %v5238_v2 = vpop.eup %5237 }
0x101e   :  { %v2030_v5 = vmul.f32 %v5238_v2, %v2014_v25  ;;  %v2218_v25 = vrot.slane %v5770_v8, %v5654_v14  ;;  %v5885_v2 = vld [vmem:[%s6218_s5 + $0x10] sm:$0xff] }
0x1020   :  { %v2036_v6 = vmul.f32 %v2035_v15, %v2030_v5  ;;  %v2279_v5 = vrot.slane %v5885_v2, %v5498_v29 }
0x1021   :  { %v5240_v4 = vpop.eup %5239 }
0x1022   :  { %v2031_v7 = vmul.f32 %v5240_v4, %v2015_v24  ;;  %v2042_v9 = vadd.f32 %v2041_v17, %v2036_v6 }
0x1024   :  { %v2037_v10 = vmul.f32 %v2035_v15, %v2031_v7  ;;  %4807 = vmatprep.mubr.msk.f32.mxu1 %vm101_vm0, %v2042_v9  ;;  %v2285_v7 = vrot.slane %v5885_v2, %v137_v31 }
0x1026   :  { %v2043_v11 = vadd.f32 %v2041_v17, %v2037_v10 }
0x1028   :  { %4808 = vmatmul.mubr.msk.f32.vlgmr.msra.gmra.mrb[24].mxu1 %vm101_vm0, %v2043_v11 }
0x1029   :  { %5061 = vmatpush3.bf16.msra.mxu1 %v5058_v57 }
0x102a   :  { %5063 = vmatprep.subr.bf16.mxu1 %v5062_v60 }
0x102d   :  { %5065 = vmatpush3.bf16.msra.mxu1 %v5062_v60 }
0x102e   :  { %4840 = vmatprep.subr.mxu1 %v5366_v42 }
0x10fb   :  { %v4809_v32 = vpop.f32.mrb[24].mxu1 }
0x10fc   :  { %v2126_v0 = vadd.f32 %v4809_v32, %v2047_v30  ;;  %v2120_v34 = vpop.f32.mrb[25].mxu1 }
0x10fd   :  { %v2121_v35 = vadd.f32 %v2120_v34, %v2047_v30 }
0x10fe   :  { %v2130_v24 = vmax.f32 %v2126_v0, 0.0 }
0x10ff   :  { %v2129_v36 = vmax.f32 %v2121_v35, 0.0 }
0x1101   :  { %4826 = vmatprep.mubr.msk.f32.mxu0 %vm2131_vm7, %v2129_v36 }
0x1102   :  { %4827 = vmatmul.mubr.msk.f32.vlgmr.msra.gmra.mrb[18].mxu0 %vm2131_vm7, %v2130_v24 }
0x1103   :  { %4852 = vmatprep.mubr.msk.f32.mxu0 %vm5367_vm1, %v5366_v42 }
0x11d5   :  { %v4828_v37 = vpop.f32.mrb[18].mxu0 }
0x11d6   :  { %v2214_v12 = vadd.f32 %v4828_v37, %v5776_v22  ;;  %v2204_v33 = vpop.f32.mrb[19].mxu0 }
0x11d7   :  { %v2213_v39 = vadd.f32 %v2204_v33, %v5778_v26 }
0x11d8   :  { %v5845_v23 = vadd.f32 %v2218_v25, %v2214_v12 }
0x11d9   :  { %v5847_v40 = vadd.f32 %v2218_v25, %v2213_v39 }
0x11da   :  { %v2253_v41 = vsel %vm101_vm0, %v5845_v23, 0.0 }
0x11db   :  { %2254 = vadd.xlane.f32.xlu1 %v2253_v41  ;;  %v2250_v43 = vsel %vm101_vm0, %v5847_v40, 0.0 }
0x11dc   :  { %2251 = vadd.xlane.f32.xlu0 %v2250_v43 }
0x1268   :  { %v2255_v45 = vpop.xlane.xlu1 %2254 }
0x1269   :  { %v2257_v8 = vmul.f32 0.03125, %v2255_v45  ;;  %v2252_v47 = vpop.xlane.xlu0 %2251 }
0x126a   :  { %v2256_v49 = vmul.f32 0.03125, %v2252_v47 }
0x126b   :  { %v2259_v22 = vsub.f32 %v5845_v23, %v2257_v8 }
0x126c   :  { %v2258_v26 = vsub.f32 %v5847_v40, %v2256_v49 }
0x126d   :  { %v2261_v50 = vmul.f32 %v2259_v22, %v2259_v22 }
0x126e   :  { %v2260_v53 = vmul.f32 %v2258_v26, %v2258_v26 }
0x126f   :  { %v2265_v51 = vsel %vm101_vm0, %v2261_v50, 0.0 }
0x1270   :  { %2266 = vadd.xlane.f32.xlu1 %v2265_v51  ;;  %v2262_v54 = vsel %vm101_vm0, %v2260_v53, 0.0 }
0x1271   :  { %2263 = vadd.xlane.f32.xlu0 %v2262_v54 }
0x12fd   :  { %v2267_v1 = vpop.xlane.xlu1 %2266 }
0x12fe   :  { %v2269_v46 = vmul.f32 0.03125, %v2267_v1  ;;  %v2264_v16 = vpop.xlane.xlu0 %2263 }
0x12ff   :  { %v2268_v19 = vmul.f32 0.03125, %v2264_v16 }
0x1300   :  { %v2271_v61 = vadd.f32 1e-05, %v2269_v46 }
0x1301   :  { %v2270_v15 = vadd.f32 1e-05, %v2268_v19 }
0x1302   :  { %5241 = vrsqrt.f32 %v2271_v61 }
0x1303   :  { %5243 = vrsqrt.f32 %v2270_v15 }
0x130c   :  { %v5242_v17 = vpop.eup %5241 }
0x130d   :  { %v5244_v6 = vpop.eup %5243  ;;  %v2275_v4 = vmul.f32 %v5242_v17, %v2259_v22 }
0x130e   :  { %v2274_v9 = vmul.f32 %v5244_v6, %v2258_v26 }
0x130f   :  { %v2281_v10 = vmul.f32 %v2279_v5, %v2275_v4 }
0x1310   :  { %v2280_v11 = vmul.f32 %v2279_v5, %v2274_v9 }
0x1311   :  { %v2287_v20 = vadd.f32 %v2285_v7, %v2281_v10 }
0x1312   :  { %v2286_v18 = vadd.f32 %v2285_v7, %v2280_v11 }
0x1314   :  { %4837 = vmatprep.mubr.msk.f32.mxu1 %vm101_vm0, %v2286_v18 }
0x1315   :  { %4838 = vmatmul.mubr.msk.f32.vlgmr.msra.gmra.mrb[26].mxu1 %vm101_vm0, %v2287_v20 }
0x1316   :  { %4842 = vmatprep.mubr.msk.f32.mxu1 %vm5367_vm1, %v5366_v42 }
0x13e8   :  { %v4839_v30 = vpop.f32.mrb[26].mxu1 }
0x13e9   :  { %v5899_v32 = vadd.f32 %v4839_v30, %v4469_v28  ;;  %v2366_v31 = vpop.f32.mrb[27].mxu1 }
0x13ea   :  { %v5901_v0 = vadd.f32 %v4469_v28, %v2366_v31 }
0x13eb   :  { %2453 = vrot.lane.b32.xlu1 %v5899_v32, %s5368_s26 }
0x13ec   :  { %2376 = vrot.lane.b32.xlu0 %v5901_v0, %s5368_s26 }
0x145d   :  { %v2454_v35 = vpop.permute.xlu1 %2453 }
0x145e   :  { %v2377_v34 = vpop.permute.xlu0 %2376 }
0x145f   :  { %4841 = vmatpush3.xpose.msk.msra.mxu1 %vm231_vm2, %v2377_v34 }
0x1460   :  { %4845 = vmatprep.subr.mxu1 %v5366_v42 }
0x1462   :  { %4843 = vmatmul.mubr.msk.f32.vlgmr.msra.gmra.mrb[28].mxu1 %vm231_vm2, %v5901_v0 }
0x1463   :  { %4846 = vmatpush3.xpose.msk.msra.mxu1 %vm231_vm2, %v2454_v35  ;;  %4847 = vmatprep.mubr.msk.f32.mxu1 %vm5367_vm1, %v5366_v42 }
0x1464   :  { %4855 = vmatprep.subr.mxu1 %v5366_v42 }
0x1466   :  { %4848 = vmatmul.mubr.msk.f32.vlgmr.msra.gmra.mrb[30].mxu1 %vm231_vm2, %v5899_v32 }
0x1467   :  { %4857 = vmatprep.mubr.msk.f32.mxu1 %vm5367_vm1, %v5366_v42 }
0x1535   :  { %v2448_v36 = vpop.f32.mrb[28].mxu1 }
0x1536   :  { %v2449_v24 = vadd.f32 %v2448_v36, %v5544_v52  ;;  %v4844_v25 = vpop.f32.mrb[29].mxu1 }
0x1538   :  { %v2529_v37 = vsel %vm383_vm4, %v2449_v24, -inf }
0x1539   :  { %2530 = vmax.xlane.f32.xlu1 %v2529_v37  ;;  %v2525_v12 = vpop.f32.mrb[30].mxu1  ;;  %v5172_v37 = vpack.i.bf16 %v5877_v59, %v5872_v58 }
0x153a   :  { %v2526_v33 = vadd.f32 %v2525_v12, %v5544_v52  ;;  %v4849_v39 = vpop.f32.mrb[31].mxu1  ;;  %v5167_v12 = vpack.i.bf16 %v5865_v56, %v5860_v55 }
0x153c   :  { %v2532_v41 = vsel %vm383_vm4, %v2526_v33, -inf }
0x153d   :  { %2533 = vmax.xlane.f32.xlu0 %v2532_v41 }
0x154a   :  { %2623 = vrot.lane.b32.xlu1 %v5899_v32, %s5370_s27 }
0x154e   :  { %2705 = vrot.lane.b32.xlu1 %v5901_v0, %s5371_s28 }
0x1552   :  { %2783 = vrot.lane.b32.xlu1 %v5899_v32, %s5371_s28 }
0x1553   :  { %2547 = vrot.lane.b32.xlu0 %v5901_v0, %s5370_s27 }
0x1556   :  { %2781 = vrot.lane.b32.xlu1 %v5899_v32, %s5372_s29 }
0x1557   :  { %2703 = vrot.lane.b32.xlu0 %v5901_v0, %s5372_s29 }
0x15c6   :  { %v2531_v43 = vpop.xlane.xlu1 %2530 }
0x15c7   :  { %v2535_v45 = vsub.f32 %v2449_v24, %v2531_v43 }
0x15c9   :  { %v2537_v8 = vmul.f32 1.442695, %v2535_v45 }
0x15ca   :  { %v2624_v47 = vpop.permute.xlu1 %2623  ;;  %v2534_v49 = vpop.xlane.xlu0 %2533 }
0x15cb   :  { %5245 = vpow2.f32 %v2537_v8  ;;  %v2536_v22 = vsub.f32 %v2526_v33, %v2534_v49  ;;  %4856 = vmatpush3.msra.mxu1 %v2624_v47 }
0x15cc   :  { %4865 = vmatprep.subr.mxu1 %v5366_v42 }
0x15cd   :  { %v2539_v26 = vmul.f32 1.442695, %v2536_v22 }
0x15ce   :  { %v2548_v50 = vpop.permute.xlu0 %2547  ;;  %v2706_v53 = vpop.permute.xlu1 %2705 }
0x15cf   :  { %5247 = vpow2.f32 %v2539_v26  ;;  %4851 = vmatpush3.msra.mxu0 %v2548_v50 }
0x15d0   :  { %4860 = vmatprep.subr.mxu0 %v5366_v42 }
0x15d2   :  { %v2784_v54 = vpop.permute.xlu1 %2783  ;;  %v2704_v60 = vpop.permute.xlu0 %2703 }
0x15d5   :  { %v5246_v51 = vpop.eup %5245 }
0x15d6   :  { %4853 = vmatmul.mubr.msk.f32.vlgmr.msra.gmra.mrb[20].mxu0 %vm383_vm4, %v5246_v51  ;;  %v2782_v1 = vpop.permute.xlu1 %2781 }
0x15d7   :  { %4861 = vmatpush3.xpose.msk.msra.mxu0 %vm231_vm2, %v2706_v53  ;;  %4862 = vmatprep.mubr.msk.f32.mxu0 %vm5367_vm1, %v5366_v42 }
0x15d8   :  { %4870 = vmatprep.subr.mxu0 %v5366_v42 }
0x15d9   :  { %v5248_v57 = vpop.eup %5247 }
0x15da   :  { %4858 = vmatmul.mubr.msk.f32.vlgmr.msra.gmra.mrb[32].mxu1 %vm383_vm4, %v5248_v57  ;;  %4863 = vmatmul.mubr.msk.f32.vlgmr.msra.gmra.mrb[22].mxu0 %vm231_vm2, %v2704_v60  ;;  %v2544_v25 = vsel %vm383_vm4, %v5248_v57, 0.0 }
0x15db   :  { %4866 = vmatpush3.xpose.msk.msra.mxu1 %vm231_vm2, %v2784_v54  ;;  %4867 = vmatprep.mubr.msk.f32.mxu1 %vm5367_vm1, %v5366_v42 }
0x15dc   :  { %4875 = vmatprep.subr.mxu1 %v5366_v42  ;;  %4872 = vmatprep.mubr.msk.f32.mxu0 %vm5367_vm1, %v5366_v42 }
0x15de   :  { %4868 = vmatmul.mubr.msk.f32.vlgmr.msra.gmra.mrb[34].mxu1 %vm231_vm2, %v2782_v1 }
0x15df   :  { %4877 = vmatprep.mubr.msk.f32.mxu1 %vm5367_vm1, %v5366_v42 }
0x16a9   :  { %v2619_v46 = vpop.f32.mrb[20].mxu0 }
0x16aa   :  { %v4854_v16 = vpop.f32.mrb[21].mxu0 }
0x16ad   :  { %v2695_v19 = vpop.f32.mrb[32].mxu1  ;;  %v2777_v61 = vpop.f32.mrb[22].mxu0 }
0x16ae   :  { %v2778_v15 = vadd.f32 %v2777_v61, %v5544_v52  ;;  %v4859_v5 = vpop.f32.mrb[33].mxu1  ;;  %v4864_v17 = vpop.f32.mrb[23].mxu0 }
0x16b0   :  { %v2859_v6 = vsel %vm383_vm4, %v2778_v15, -inf }
0x16b1   :  { %2860 = vmax.xlane.f32.xlu0 %v2859_v6  ;;  %v2855_v4 = vpop.f32.mrb[34].mxu1  ;;  %v3145_v6 = vrot.slane %v5885_v2, %v999_v13  ;;  %v4452_v13 = vld [vmem:[%s6216_s3 + $0x98] sm:$0xff] }
0x16b2   :  { %v2856_v7 = vadd.f32 %v2855_v4, %v5544_v52  ;;  %v4869_v9 = vpop.f32.mrb[35].mxu1 }
0x16b4   :  { %v2862_v10 = vsel %vm383_vm4, %v2856_v7, -inf }
0x16b5   :  { %2863 = vmax.xlane.f32.xlu1 %v2862_v10 }
0x16c6   :  { %2953 = vrot.lane.b32.xlu1 %v5899_v32, %s5373_s30 }
0x16c7   :  { %2877 = vrot.lane.b32.xlu0 %v5901_v0, %s5373_s30  ;;  %v2541_v0 = vsel %vm383_vm4, %v5246_v51, 0.0 }
0x173e   :  { %v2861_v11 = vpop.xlane.xlu0 %2860 }
0x173f   :  { %v2865_v18 = vsub.f32 %v2778_v15, %v2861_v11 }
0x1741   :  { %v2867_v20 = vmul.f32 1.442695, %v2865_v18 }
0x1742   :  { %v2878_v28 = vpop.permute.xlu0 %2877  ;;  %v2864_v30 = vpop.xlane.xlu1 %2863 }
0x1743   :  { %5249 = vpow2.f32 %v2867_v20  ;;  %v2866_v31 = vsub.f32 %v2856_v7, %v2864_v30  ;;  %4871 = vmatpush3.msra.mxu0 %v2878_v28 }
0x1745   :  { %v2869_v34 = vmul.f32 1.442695, %v2866_v31 }
0x1746   :  { %v2954_v52 = vpop.permute.xlu1 %2953 }
0x1747   :  { %5251 = vpow2.f32 %v2869_v34  ;;  %4876 = vmatpush3.msra.mxu1 %v2954_v52 }
0x174d   :  { %v5250_v35 = vpop.eup %5249 }
0x174e   :  { %4873 = vmatmul.mubr.msk.f32.vlgmr.msra.gmra.mrb[24].mxu0 %vm383_vm4, %v5250_v35  ;;  %v2871_v32 = vsel %vm383_vm4, %v5250_v35, 0.0 }
0x174f   :  { %2872 = vadd.xlane.f32.xlu0 %v2871_v32 }
0x1751   :  { %v5252_v36 = vpop.eup %5251 }
0x1752   :  { %4878 = vmatmul.mubr.msk.f32.vlgmr.msra.gmra.mrb[36].mxu1 %vm383_vm4, %v5252_v36  ;;  %v2874_v24 = vsel %vm383_vm4, %v5252_v36, 0.0 }
0x1753   :  { %2542 = vadd.xlane.f32.xlu0 %v2541_v0  ;;  %2875 = vadd.xlane.f32.xlu1 %v2874_v24 }
0x1757   :  { %2545 = vadd.xlane.f32.xlu0 %v2544_v25  ;;  %v4446_v25 = vld [vmem:[%s6216_s3 + $0x68] sm:$0xff] }
0x1764   :  { %5173 = vrot.lane.b32.xlu1 %v5172_v37, %s5374_s11  ;;  %v4449_v37 = vld [vmem:[%s6216_s3 + $0x80] sm:$0xff] }
0x176d   :  { %5168 = vrot.lane.b32.xlu0 %v5167_v12, %s5374_s11  ;;  %v6014_v12 = vpack.i.bf16 %v4449_v37, %v4446_v25 }
0x17dc   :  { %v2873_v33 = vpop.xlane.xlu0 %2872 }
0x17e0   :  { %v2543_v39 = vpop.xlane.xlu0 %2542  ;;  %v2876_v41 = vpop.xlane.xlu1 %2875 }
0x17e1   :  { %5253 = vrcp.f32 %v2543_v39 }
0x17e4   :  { %v2546_v43 = vpop.xlane.xlu0 %2545  ;;  %v5174_v45 = vpop.permute.xlu1 %5173 }
0x17e5   :  { %5255 = vrcp.f32 %v2546_v43  ;;  %v5176_v8 = vunpack.i.h.bf16 %v5174_v45  ;;  %v5175_v47 = vunpack.i.l.bf16 %v5174_v45 }
0x17e6   :  { %5257 = vrcp.f32 %v2873_v33  ;;  %v5074_v33 = vpack.c.bf16 %v4449_v37, %v4446_v25 }
0x17e7   :  { %v5070_v50 = vpack.c.bf16 %v5176_v8, %v5175_v47  ;;  %5259 = vrcp.f32 %v2876_v41 }
0x17e8   :  { %v5169_v49 = vpop.permute.xlu0 %5168  ;;  %5075 = vmatprep.subr.bf16.mxu1 %v5074_v33 }
0x17e9   :  { %v5171_v22 = vunpack.i.h.bf16 %v5169_v49  ;;  %v5170_v26 = vunpack.i.l.bf16 %v5169_v49  ;;  %5077 = vmatpush3.bf16.msra.mxu1 %v5074_v33 }
0x17eb   :  { %v5254_v58 = vpop.eup %5253  ;;  %v5066_v59 = vpack.c.bf16 %v5171_v22, %v5170_v26 }
0x17ec   :  { %v2701_v53 = vmul.f32 %v5254_v58, %v2619_v46 }
0x17ed   :  { %5067 = vmatprep.subr.bf16.mxu0 %v5066_v59 }
0x17ee   :  { %5069 = vmatpush3.bf16.msra.mxu0 %v5066_v59 }
0x17ef   :  { %v5256_v55 = vpop.eup %5255  ;;  %5071 = vmatprep.subr.bf16.mxu0 %v5070_v50 }
0x17f0   :  { %v2702_v56 = vmul.f32 %v5256_v55, %v2695_v19  ;;  %v5258_v51 = vpop.eup %5257 }
0x17f1   :  { %v5260_v1 = vpop.eup %5259 }
0x17f2   :  { %5073 = vmatpush3.bf16.msra.mxu0 %v5070_v50 }
0x1821   :  { %v2949_v54 = vpop.f32.mrb[24].mxu0 }
0x1822   :  { %v3031_v57 = vmul.f32 %v5258_v51, %v2949_v54  ;;  %v4874_v60 = vpop.f32.mrb[25].mxu0 }
0x1824   :  { %3035 = vrot.lane.b32.xlu1 %v3031_v57, %s5375_s12  ;;  %v3177_v57 = vrot.slane %v5885_v2, %v5654_v14 }
0x1825   :  { %v3025_v16 = vpop.f32.mrb[36].mxu1 }
0x1826   :  { %v3032_v61 = vmul.f32 %v5260_v1, %v3025_v16  ;;  %v4879_v15 = vpop.f32.mrb[37].mxu1  ;;  %v5289_v16 = vld [vmem:[#allocation5 + $0x8] sm:$0xff] }
0x1827   :  { %v3183_v15 = vrot.slane %v5885_v2, %v1037_v3 }
0x1828   :  { %3037 = vrot.lane.b32.xlu1 %v3032_v61, %s5375_s12 }
0x1896   :  { %v3036_v46 = vpop.permute.xlu1 %3035 }
0x1897   :  { %v3041_v5 = vsel %vm231_vm2, %v2701_v53, %v3036_v46 }
0x1898   :  { %4888 = vmatprep.mubr.msk.f32.mxu0 %vm101_vm0, %v3041_v5 }
0x189a   :  { %v3038_v19 = vpop.permute.xlu1 %3037 }
0x189b   :  { %v3042_v17 = vsel %vm231_vm2, %v2702_v56, %v3038_v19 }
0x189c   :  { %4889 = vmatmul.mubr.msk.f32.vlgmr.msra.gmra.mrb[26].mxu0 %vm101_vm0, %v3042_v17  ;;  %v6035_v17 = vld [vmem:[%s6219_s6 + $0x2] sm:$0x3] }
0x189d   :  { %4910 = vmatprep.mubr.msk.f32.mxu0 %vm101_vm0, %v5648_v48  ;;  %v3274_v3 = vrot.slane %v6035_v17, %v5498_v29 }
0x196f   :  { %v4890_v4 = vpop.f32.mrb[26].mxu0 }
0x1970   :  { %v3141_v7 = vadd.f32 %v4890_v4, %v5845_v23  ;;  %v3131_v9 = vpop.f32.mrb[27].mxu0  ;;  %v4455_v23 = vld [vmem:[%s6216_s3 + $0xb0] sm:$0xff] }
0x1971   :  { %v3140_v10 = vadd.f32 %v3131_v9, %v5847_v40  ;;  %v6000_v40 = vpack.i.bf16 %v4455_v23, %v4452_v13  ;;  %v5078_v39 = vpack.c.bf16 %v4455_v23, %v4452_v13  ;;  %v3189_v9 = vrot.slane %v5885_v2, %v1043_v21 }
0x1972   :  { %v5986_v11 = vadd.f32 %v3145_v6, %v3141_v7 }
0x1973   :  { %v5988_v18 = vadd.f32 %v3145_v6, %v3140_v10  ;;  %5079 = vmatprep.subr.bf16.mxu1 %v5078_v39 }
0x1974   :  { %v3151_v20 = vsel %vm101_vm0, %v5986_v11, 0.0  ;;  %5081 = vmatpush3.bf16.msra.mxu1 %v5078_v39 }
0x1975   :  { %3152 = vadd.xlane.f32.xlu1 %v3151_v20  ;;  %v3148_v48 = vsel %vm101_vm0, %v5988_v18, 0.0  ;;  %4913 = vmatprep.subr.mxu1 %v5366_v42 }
0x1976   :  { %3149 = vadd.xlane.f32.xlu0 %v3148_v48 }
0x1986   :  { %5183 = vrot.lane.b32.xlu1 %v6000_v40, %s5368_s26 }
0x1a02   :  { %v3153_v28 = vpop.xlane.xlu1 %3152 }
0x1a03   :  { %v3155_v30 = vmul.f32 0.03125, %v3153_v28  ;;  %v3150_v31 = vpop.xlane.xlu0 %3149 }
0x1a04   :  { %v3154_v34 = vmul.f32 0.03125, %v3150_v31 }
0x1a05   :  { %v3157_v52 = vsub.f32 %v5986_v11, %v3155_v30 }
0x1a06   :  { %v3156_v35 = vsub.f32 %v5988_v18, %v3154_v34  ;;  %v5184_v47 = vpop.permute.xlu1 %5183 }
0x1a07   :  { %v3159_v32 = vmul.f32 %v3157_v52, %v3157_v52  ;;  %v5186_v26 = vunpack.i.h.bf16 %v5184_v47  ;;  %v5185_v58 = vunpack.i.l.bf16 %v5184_v47 }
0x1a08   :  { %v3158_v0 = vmul.f32 %v3156_v35, %v3156_v35 }
0x1a09   :  { %v3163_v36 = vsel %vm101_vm0, %v3159_v32, 0.0  ;;  %v5086_v56 = vpack.c.bf16 %v5186_v26, %v5185_v58 }
0x1a0a   :  { %3164 = vadd.xlane.f32.xlu0 %v3163_v36  ;;  %v3160_v24 = vsel %vm101_vm0, %v3158_v0, 0.0 }
0x1a0e   :  { %3161 = vadd.xlane.f32.xlu0 %v3160_v24 }
0x1a24   :  { %5178 = vrot.lane.b32.xlu0 %v6014_v12, %s5368_s26 }
0x1a97   :  { %v3165_v41 = vpop.xlane.xlu0 %3164 }
0x1a98   :  { %v3167_v43 = vmul.f32 0.03125, %v3165_v41 }
0x1a9a   :  { %v3169_v45 = vadd.f32 1e-05, %v3167_v43 }
0x1a9b   :  { %v3162_v8 = vpop.xlane.xlu0 %3161 }
0x1a9c   :  { %5261 = vrsqrt.f32 %v3169_v45  ;;  %v3166_v49 = vmul.f32 0.03125, %v3162_v8 }
0x1a9e   :  { %v3168_v22 = vadd.f32 1e-05, %v3166_v49 }
0x1a9f   :  { %v5179_v59 = vpop.permute.xlu0 %5178 }
0x1aa0   :  { %5263 = vrsqrt.f32 %v3168_v22  ;;  %v5181_v50 = vunpack.i.h.bf16 %v5179_v59  ;;  %v5180_v53 = vunpack.i.l.bf16 %v5179_v59 }
0x1aa2   :  { %v5082_v55 = vpack.c.bf16 %v5181_v50, %v5180_v53 }
0x1aa4   :  { %5083 = vmatprep.subr.bf16.mxu0 %v5082_v55 }
0x1aa5   :  { %5085 = vmatpush3.bf16.msra.mxu0 %v5082_v55 }
0x1aa6   :  { %v5262_v51 = vpop.eup %5261  ;;  %5087 = vmatprep.subr.bf16.mxu0 %v5086_v56 }
0x1aa7   :  { %v3173_v54 = vmul.f32 %v5262_v51, %v3157_v52 }
0x1aa9   :  { %5089 = vmatpush3.bf16.msra.mxu0 %v5086_v56  ;;  %v3179_v61 = vmul.f32 %v3177_v57, %v3173_v54 }
0x1aaa   :  { %v5264_v60 = vpop.eup %5263  ;;  %4923 = vmatprep.subr.mxu0 %v5366_v42 }
0x1aab   :  { %v3172_v1 = vmul.f32 %v5264_v60, %v3156_v35  ;;  %v3185_v19 = vadd.f32 %v3183_v15, %v3179_v61 }
0x1aac   :  { %4911 = vmatmul.mubr.msk.f32.vlgmr.msra.gmra.mrb[28].mxu0 %vm101_vm0, %v5289_v16 }
0x1aad   :  { %v3178_v46 = vmul.f32 %v3177_v57, %v3172_v1  ;;  %4925 = vmatprep.mubr.msk.f32.mxu0 %vm5367_vm1, %v5366_v42 }
0x1aaf   :  { %v3184_v5 = vadd.f32 %v3183_v15, %v3178_v46 }
0x1ab1   :  { %4899 = vmatprep.mubr.msk.f32.mxu1 %vm101_vm0, %v3184_v5 }
0x1ab2   :  { %4900 = vmatmul.mubr.msk.f32.vlgmr.msra.gmra.mrb[38].mxu1 %vm101_vm0, %v3185_v19 }
0x1ab3   :  { %4915 = vmatprep.mubr.msk.f32.mxu1 %vm5367_vm1, %v5366_v42 }
0x1b7f   :  { %v4912_v6 = vpop.f32.mrb[28].mxu0 }
0x1b80   :  { %v3357_v4 = vpop.f32.mrb[29].mxu0  ;;  %v6047_v13 = vadd.f32 %v4912_v6, %v3274_v3 }
0x1b81   :  { %v6039_v7 = vadd.f32 %v3357_v4, %v3274_v3 }
0x1b83   :  { %4914 = vmatpush3.xpose.msk.msra.mxu1 %vm231_vm2, %v6039_v7 }
0x1b84   :  { %4918 = vmatprep.subr.mxu1 %v5366_v42 }
0x1b85   :  { %v4901_v10 = vpop.f32.mrb[38].mxu1 }
0x1b86   :  { %v3262_v20 = vpop.f32.mrb[39].mxu1  ;;  %v3268_v23 = vadd.f32 %v4901_v10, %v3189_v9 }
0x1b87   :  { %v3263_v48 = vadd.f32 %v3262_v20, %v3189_v9 }
0x1b89   :  { %4916 = vmatmul.mubr.msk.f32.vlgmr.msra.gmra.mrb[40].mxu1 %vm231_vm2, %v3263_v48 }
0x1b8a   :  { %4919 = vmatpush3.xpose.msk.msra.mxu1 %vm231_vm2, %v6047_v13  ;;  %4920 = vmatprep.mubr.msk.f32.mxu1 %vm5367_vm1, %v5366_v42 }
0x1b8b   :  { %4928 = vmatprep.subr.mxu1 %v5366_v42 }
0x1b8d   :  { %4921 = vmatmul.mubr.msk.f32.vlgmr.msra.gmra.mrb[42].mxu1 %vm231_vm2, %v3268_v23 }
0x1b8e   :  { %4930 = vmatprep.mubr.msk.f32.mxu1 %vm5367_vm1, %v5366_v42 }
0x1c5c   :  { %v3438_v21 = vpop.f32.mrb[40].mxu1 }
0x1c5d   :  { %v3439_v28 = vadd.f32 %v3438_v21, %v5705_v38  ;;  %v4917_v30 = vpop.f32.mrb[41].mxu1 }
0x1c5f   :  { %v3518_v31 = vsel %vm383_vm4, %v3439_v28, -inf }
0x1c60   :  { %3519 = vmax.xlane.f32.xlu1 %v3518_v31  ;;  %v3514_v34 = vpop.f32.mrb[42].mxu1 }
0x1c61   :  { %v3515_v52 = vadd.f32 %v3514_v34, %v5710_v44  ;;  %v4922_v35 = vpop.f32.mrb[43].mxu1 }
0x1c63   :  { %v3521_v32 = vsel %vm383_vm4, %v3515_v52, -inf }
0x1c64   :  { %3522 = vmax.xlane.f32.xlu0 %v3521_v32 }
0x1c71   :  { %3612 = vrot.lane.b32.xlu1 %v6047_v13, %s5368_s26 }
0x1c75   :  { %3694 = vrot.lane.b32.xlu1 %v6039_v7, %s5372_s29 }
0x1c79   :  { %3772 = vrot.lane.b32.xlu1 %v6047_v13, %s5372_s29 }
0x1c7a   :  { %3536 = vrot.lane.b32.xlu0 %v6039_v7, %s5368_s26  ;;  %s5376_s26 = smov [#allocation7]  }
0x1c7d   :  { %3770 = vrot.lane.b32.xlu1 %v3268_v23, %s5372_s29 }
0x1c7e   :  { %3692 = vrot.lane.b32.xlu0 %v3263_v48, %s5372_s29 }
0x1ced   :  { %v3520_v36 = vpop.xlane.xlu1 %3519 }
0x1cee   :  { %v3524_v0 = vsub.f32 %v3439_v28, %v3520_v36 }
0x1cf0   :  { %v3526_v24 = vmul.f32 1.442695, %v3524_v0 }
0x1cf1   :  { %v3613_v25 = vpop.permute.xlu1 %3612  ;;  %v3523_v37 = vpop.xlane.xlu0 %3522 }
0x1cf2   :  { %5265 = vpow2.f32 %v3526_v24  ;;  %v3525_v33 = vsub.f32 %v3515_v52, %v3523_v37  ;;  %4929 = vmatpush3.msra.mxu1 %v3613_v25 }
0x1cf3   :  { %4938 = vmatprep.subr.mxu1 %v5366_v42 }
0x1cf4   :  { %v3528_v39 = vmul.f32 1.442695, %v3525_v33 }
0x1cf5   :  { %v3537_v41 = vpop.permute.xlu0 %3536  ;;  %v3695_v43 = vpop.permute.xlu1 %3694 }
0x1cf6   :  { %5267 = vpow2.f32 %v3528_v39  ;;  %4924 = vmatpush3.msra.mxu0 %v3537_v41 }
0x1cf7   :  { %4933 = vmatprep.subr.mxu0 %v5366_v42 }
0x1cf9   :  { %v3773_v8 = vpop.permute.xlu1 %3772  ;;  %v3693_v49 = vpop.permute.xlu0 %3692 }
0x1cfc   :  { %v5266_v45 = vpop.eup %5265 }
0x1cfd   :  { %4926 = vmatmul.mubr.msk.f32.vlgmr.msra.gmra.mrb[30].mxu0 %vm383_vm4, %v5266_v45  ;;  %v3771_v22 = vpop.permute.xlu1 %3770  ;;  %v3530_v4 = vsel %vm383_vm4, %v5266_v45, 0.0 }
0x1cfe   :  { %4934 = vmatpush3.xpose.msk.msra.mxu0 %vm231_vm2, %v3695_v43  ;;  %4935 = vmatprep.mubr.msk.f32.mxu0 %vm5367_vm1, %v5366_v42 }
0x1cff   :  { %4943 = vmatprep.subr.mxu0 %v5366_v42 }
0x1d00   :  { %v5268_v47 = vpop.eup %5267 }
0x1d01   :  { %4931 = vmatmul.mubr.msk.f32.vlgmr.msra.gmra.mrb[44].mxu1 %vm383_vm4, %v5268_v47  ;;  %4936 = vmatmul.mubr.msk.f32.vlgmr.msra.gmra.mrb[32].mxu0 %vm231_vm2, %v3693_v49  ;;  %v3533_v9 = vsel %vm383_vm4, %v5268_v47, 0.0 }
0x1d02   :  { %4939 = vmatpush3.xpose.msk.msra.mxu1 %vm231_vm2, %v3773_v8  ;;  %4940 = vmatprep.mubr.msk.f32.mxu1 %vm5367_vm1, %v5366_v42 }
0x1d03   :  { %4948 = vmatprep.subr.mxu1 %v5366_v42  ;;  %4945 = vmatprep.mubr.msk.f32.mxu0 %vm5367_vm1, %v5366_v42 }
0x1d05   :  { %4941 = vmatmul.mubr.msk.f32.vlgmr.msra.gmra.mrb[46].mxu1 %vm231_vm2, %v3771_v22  ;;  %v6117_v22 = vld [vmem:[%s6218_s5 + $0x18] sm:$0x3]  ;;  %s4393_s5 = sshll.u32 %s5376_s26, 4  ;;  %s4394_s5 = int_to_ptr.vmem [resolvable:$true] %s4393_s5 }
0x1d06   :  { %4950 = vmatprep.mubr.msk.f32.mxu1 %vm5367_vm1, %v5366_v42  ;;  %p5339_p3 = scmp.lt.s32.totalorder %s4394_s5, %s4394_s5 }
0x1dd0   :  { %v3608_v26 = vpop.f32.mrb[30].mxu0 }
0x1dd1   :  { %v4927_v58 = vpop.f32.mrb[31].mxu0 }
0x1dd4   :  { %v3684_v59 = vpop.f32.mrb[44].mxu1  ;;  %v3766_v50 = vpop.f32.mrb[32].mxu0 }
0x1dd5   :  { %v3767_v53 = vadd.f32 %v3766_v50, %v5705_v38  ;;  %v4932_v55 = vpop.f32.mrb[45].mxu1  ;;  %v4937_v56 = vpop.f32.mrb[33].mxu0 }
0x1dd7   :  { %v3848_v51 = vsel %vm383_vm4, %v3767_v53, -inf }
0x1dd8   :  { %3849 = vmax.xlane.f32.xlu0 %v3848_v51  ;;  %v3844_v54 = vpop.f32.mrb[46].mxu1 }
0x1dd9   :  { %v3845_v57 = vadd.f32 %v3844_v54, %v5710_v44  ;;  %v4942_v60 = vpop.f32.mrb[47].mxu1 }
0x1ddb   :  { %v3851_v1 = vsel %vm383_vm4, %v3845_v57, -inf }
0x1ddc   :  { %3852 = vmax.xlane.f32.xlu1 %v3851_v1 }
0x1ded   :  { %3942 = vrot.lane.b32.xlu1 %v6047_v13, %s5371_s28 }
0x1dee   :  { %3866 = vrot.lane.b32.xlu0 %v6039_v7, %s5371_s28 }
0x1e65   :  { %v3850_v42 = vpop.xlane.xlu0 %3849 }
0x1e66   :  { %v3854_v38 = vsub.f32 %v3767_v53, %v3850_v42 }
0x1e68   :  { %v3856_v16 = vmul.f32 1.442695, %v3854_v38 }
0x1e69   :  { %v3867_v61 = vpop.permute.xlu0 %3866  ;;  %v3853_v15 = vpop.xlane.xlu1 %3852 }
0x1e6a   :  { %5269 = vpow2.f32 %v3856_v16  ;;  %v3855_v46 = vsub.f32 %v3845_v57, %v3853_v15  ;;  %4944 = vmatpush3.msra.mxu0 %v3867_v61 }
0x1e6c   :  { %v3858_v5 = vmul.f32 1.442695, %v3855_v46  ;;  %v4447_v46 = vld [vmem:[%s6216_s3 + $0x70] sm:$0xff] }
0x1e6d   :  { %v3943_v44 = vpop.permute.xlu1 %3942 }
0x1e6e   :  { %5271 = vpow2.f32 %v3858_v5  ;;  %4949 = vmatpush3.msra.mxu1 %v3943_v44  ;;  %v4450_v5 = vld [vmem:[%s6216_s3 + $0x88] sm:$0xff] }
0x1e6f   :  { %v5098_v44 = vpack.c.bf16 %v4450_v5, %v4447_v46 }
0x1e71   :  { %5099 = vmatprep.subr.bf16.mxu1 %v5098_v44 }
0x1e74   :  { %v5270_v19 = vpop.eup %5269 }
0x1e75   :  { %4946 = vmatmul.mubr.msk.f32.vlgmr.msra.gmra.mrb[34].mxu0 %vm383_vm4, %v5270_v19  ;;  %v3860_v3 = vsel %vm383_vm4, %v5270_v19, 0.0  ;;  %v4453_v19 = vld [vmem:[%s6216_s3 + $0xa0] sm:$0xff] }
0x1e76   :  { %3861 = vadd.xlane.f32.xlu0 %v3860_v3  ;;  %v4456_v3 = vld [vmem:[%s6216_s3 + $0xb8] sm:$0xff] }
0x1e78   :  { %v5272_v6 = vpop.eup %5271 }
0x1e79   :  { %4951 = vmatmul.mubr.msk.f32.vlgmr.msra.gmra.mrb[48].mxu1 %vm383_vm4, %v5272_v6  ;;  %v3863_v7 = vsel %vm383_vm4, %v5272_v6, 0.0  ;;  %v5102_v6 = vpack.c.bf16 %v4456_v3, %v4453_v19  ;;  %v4347_v3 = vld [vmem:[%s6221_s8] sm:$0x3]  ;;  %s5334_s8 = scalar_lea.vmem %s4394_s5, 256 }
0x1e7a   :  { %3531 = vadd.xlane.f32.xlu0 %v3530_v4  ;;  %3864 = vadd.xlane.f32.xlu1 %v3863_v7  ;;  %v4461_v4 = vld [vmem:[%s6217_s4 + $0x40] sm:$0xff]  ;;  %v4462_v7 = vld [vmem:[%s6217_s4 + $0x48] sm:$0xff]  ;;  %p5335_p2 = scmp.ne.s32.totalorder %s4394_s5, %s5334_s8  ;;  %p5340_p4 = scmp.lt.s32.totalorder %s5334_s8, %s5334_s8 }
0x1e7b   :  { %5101 = vmatpush3.bf16.msra.mxu1 %v5098_v44 }
0x1e7c   :  { %5103 = vmatprep.subr.bf16.mxu1 %v5102_v6  ;;  %p5341_p5 = por %p5340_p4, %p5339_p3 }
0x1e7e   :  { %3534 = vadd.xlane.f32.xlu0 %v3533_v9  ;;  %v4463_v9 = vld [vmem:[%s6217_s4 + $0x50] sm:$0xff]  ;;  %p5342_p6 = pnand %p5341_p5, %p5335_p2 }
0x1e7f   :  { %5105 = vmatpush3.bf16.msra.mxu1 %v5102_v6  ;;  %v4377_v6 = vrot.slane %v4347_v3, %v5498_v29 }
0x1e8b   :  { %5193 = vrot.lane.b32.xlu1 %v6000_v40, %s5374_s11 }
0x1e94   :  { %5188 = vrot.lane.b32.xlu0 %v6014_v12, %s5374_s11 }
0x1f03   :  { %v3862_v10 = vpop.xlane.xlu0 %3861 }
0x1f07   :  { %v3532_v20 = vpop.xlane.xlu0 %3531  ;;  %v3865_v48 = vpop.xlane.xlu1 %3864 }
0x1f08   :  { %5273 = vrcp.f32 %v3532_v20  ;;  %v4464_v20 = vld [vmem:[%s6217_s4 + $0x58] sm:$0xff] }
0x1f0b   :  { %v3535_v13 = vpop.xlane.xlu0 %3534  ;;  %v5194_v23 = vpop.permute.xlu1 %5193 }
0x1f0c   :  { %5275 = vrcp.f32 %v3535_v13  ;;  %v5196_v21 = vunpack.i.h.bf16 %v5194_v23  ;;  %v5195_v28 = vunpack.i.l.bf16 %v5194_v23  ;;  %v4465_v13 = vld [vmem:[%s6217_s4 + $0x60] sm:$0xff]  ;;  %v4466_v23 = vld [vmem:[%s6217_s4 + $0x68] sm:$0xff] }
0x1f0d   :  { %5277 = vrcp.f32 %v3862_v10  ;;  %v5106_v10 = vpack.c.bf16 %v4462_v7, %v4461_v4 }
0x1f0e   :  { %v5094_v32 = vpack.c.bf16 %v5196_v21, %v5195_v28  ;;  %5279 = vrcp.f32 %v3865_v48  ;;  %v5110_v48 = vpack.c.bf16 %v4464_v20, %v4463_v9  ;;  %v5114_v21 = vpack.c.bf16 %v4466_v23, %v4465_v13 }
0x1f0f   :  { %v5189_v30 = vpop.permute.xlu0 %5188 }
0x1f10   :  { %v5191_v31 = vunpack.i.h.bf16 %v5189_v30  ;;  %v5190_v34 = vunpack.i.l.bf16 %v5189_v30 }
0x1f12   :  { %v5274_v52 = vpop.eup %5273  ;;  %v5090_v35 = vpack.c.bf16 %v5191_v31, %v5190_v34 }
0x1f13   :  { %v3690_v36 = vmul.f32 %v5274_v52, %v3608_v26  ;;  %v4130_v26 = vrot.slane %v6117_v22, %v5498_v29 }
0x1f14   :  { %5091 = vmatprep.subr.bf16.mxu0 %v5090_v35 }
0x1f15   :  { %5093 = vmatpush3.bf16.msra.mxu0 %v5090_v35 }
0x1f16   :  { %v5276_v40 = vpop.eup %5275  ;;  %5095 = vmatprep.subr.bf16.mxu0 %v5094_v32 }
0x1f17   :  { %v3691_v12 = vmul.f32 %v5276_v40, %v3684_v59  ;;  %v5278_v0 = vpop.eup %5277 }
0x1f18   :  { %v5280_v33 = vpop.eup %5279 }
0x1f19   :  { %5097 = vmatpush3.bf16.msra.mxu0 %v5094_v32  ;;  %v4162_v32 = vrot.slane %v5885_v2, %v2034_v62  ;;  %v4467_v62 = vld [vmem:[%s6217_s4 + $0x70] sm:$0xff] }
0x1f1a   :  { %5107 = vmatprep.subr.bf16.mxu0 %v5106_v10 }
0x1f48   :  { %v3938_v24 = vpop.f32.mrb[34].mxu0 }
0x1f49   :  { %v4020_v25 = vmul.f32 %v5278_v0, %v3938_v24  ;;  %v4947_v37 = vpop.f32.mrb[35].mxu0 }
0x1f4b   :  { %4024 = vrot.lane.b32.xlu1 %v4020_v25, %s5375_s12 }
0x1f4c   :  { %v4014_v39 = vpop.f32.mrb[48].mxu1 }
0x1f4d   :  { %v4021_v41 = vmul.f32 %v5280_v33, %v4014_v39  ;;  %v4952_v43 = vpop.f32.mrb[49].mxu1 }
0x1f4f   :  { %4026 = vrot.lane.b32.xlu1 %v4021_v41, %s5375_s12  ;;  %v5118_v41 = vpack.c.bf16 %v4468_v27, %v4467_v62 }
0x1fbd   :  { %v4025_v45 = vpop.permute.xlu1 %4024 }
0x1fbe   :  { %v4030_v8 = vsel %vm231_vm2, %v3690_v36, %v4025_v45 }
0x1fbf   :  { %4961 = vmatprep.mubr.msk.f32.mxu0 %vm101_vm0, %v4030_v8 }
0x1fc1   :  { %v4027_v47 = vpop.permute.xlu1 %4026 }
0x1fc2   :  { %v4031_v49 = vsel %vm231_vm2, %v3691_v12, %v4027_v47  ;;  %v4168_v12 = vrot.slane %v5885_v2, %v2040_v63  ;;  %v4174_v63 = vrot.slane %v6035_v17, %v5654_v14 }
0x1fc3   :  { %4962 = vmatmul.mubr.msk.f32.vlgmr.msra.gmra.mrb[36].mxu0 %vm101_vm0, %v4031_v49 }
0x1fc4   :  { %5109 = vmatpush3.bf16.msra.mxu0 %v5106_v10  ;;  %v4383_v10 = vrot.slane %v4347_v3, %v5654_v14 }
0x1fc5   :  { %5111 = vmatprep.subr.bf16.mxu0 %v5110_v48 }
0x1fc8   :  { %5113 = vmatpush3.bf16.msra.mxu0 %v5110_v48 }
0x1fc9   :  { %5115 = vmatprep.subr.bf16.mxu0 %v5114_v21 }
0x1fcc   :  { %5117 = vmatpush3.bf16.msra.mxu0 %v5114_v21 }
0x1fcd   :  { %5119 = vmatprep.subr.bf16.mxu0 %v5118_v41 }
0x1fd0   :  { %5121 = vmatpush3.bf16.msra.mxu0 %v5118_v41 }
0x2096   :  { %v4963_v58 = vpop.f32.mrb[36].mxu0 }
0x2097   :  { %v4126_v59 = vadd.f32 %v4963_v58, %v5986_v11  ;;  %v4116_v50 = vpop.f32.mrb[37].mxu0 }
0x2098   :  { %v4125_v53 = vadd.f32 %v4116_v50, %v5988_v18 }
0x2099   :  { %v6123_v55 = vadd.f32 %v4130_v26, %v4126_v59 }
0x209a   :  { %v6125_v56 = vadd.f32 %v4130_v26, %v4125_v53  ;;  %v4344_v26 = vrot.slane %v6117_v22, %v5654_v14 }
0x209b   :  { %v4136_v51 = vsel %vm101_vm0, %v6123_v55, 0.0 }
0x209c   :  { %4137 = vadd.xlane.f32.xlu1 %v4136_v51  ;;  %v4133_v54 = vsel %vm101_vm0, %v6125_v56, 0.0 }
0x209d   :  { %4134 = vadd.xlane.f32.xlu0 %v4133_v54 }
0x2129   :  { %v4138_v57 = vpop.xlane.xlu1 %4137 }
0x212a   :  { %v4140_v60 = vmul.f32 0.03125, %v4138_v57  ;;  %v4135_v1 = vpop.xlane.xlu0 %4134 }
0x212b   :  { %v4139_v42 = vmul.f32 0.03125, %v4135_v1 }
0x212c   :  { %v4142_v11 = vsub.f32 %v6123_v55, %v4140_v60 }
0x212d   :  { %v4141_v18 = vsub.f32 %v6125_v56, %v4139_v42 }
0x212e   :  { %v4144_v61 = vmul.f32 %v4142_v11, %v4142_v11 }
0x212f   :  { %v4143_v38 = vmul.f32 %v4141_v18, %v4141_v18 }
0x2130   :  { %v4148_v15 = vsel %vm101_vm0, %v4144_v61, 0.0 }
0x2131   :  { %v4145_v16 = vsel %vm101_vm0, %v4143_v38, 0.0 }
0x2132   :  { %4146 = vadd.xlane.f32.xlu0 %v4145_v16 }
0x2136   :  { %4149 = vadd.xlane.f32.xlu0 %v4148_v15 }
0x21bf   :  { %v4147_v28 = vpop.xlane.xlu0 %4146 }
0x21c0   :  { %v4151_v30 = vmul.f32 0.03125, %v4147_v28 }
0x21c2   :  { %v4153_v31 = vadd.f32 1e-05, %v4151_v30 }
0x21c3   :  { %v4150_v34 = vpop.xlane.xlu0 %4149 }
0x21c4   :  { %5281 = vrsqrt.f32 %v4153_v31  ;;  %v4152_v52 = vmul.f32 0.03125, %v4150_v34 }
0x21c6   :  { %v4154_v35 = vadd.f32 1e-05, %v4152_v52 }
0x21c8   :  { %5283 = vrsqrt.f32 %v4154_v35 }
0x21ce   :  { %v5282_v36 = vpop.eup %5281 }
0x21cf   :  { %v4157_v40 = vmul.f32 %v5282_v36, %v4141_v18 }
0x21d1   :  { %v4163_v0 = vmul.f32 %v4162_v32, %v4157_v40 }
0x21d2   :  { %v5284_v24 = vpop.eup %5283 }
0x21d3   :  { %v4158_v25 = vmul.f32 %v5284_v24, %v4142_v11  ;;  %v4169_v37 = vadd.f32 %v4168_v12, %v4163_v0 }
0x21d5   :  { %v4164_v33 = vmul.f32 %v4162_v32, %v4158_v25  ;;  %4972 = vmatprep.mubr.msk.f32.mxu1 %vm101_vm0, %v4169_v37 }
0x21d7   :  { %v4170_v39 = vadd.f32 %v4168_v12, %v4164_v33 }
0x21d9   :  { %4973 = vmatmul.mubr.msk.f32.vlgmr.msra.gmra.mrb[50].mxu1 %vm101_vm0, %v4170_v39 }
0x22ac   :  { %v4974_v2 = vpop.f32.mrb[50].mxu1 }
0x22ad   :  { %v4253_v43 = vadd.f32 %v4974_v2, %v4174_v63  ;;  %v4247_v45 = vpop.f32.mrb[51].mxu1 }
0x22ae   :  { %v4248_v8 = vadd.f32 %v4247_v45, %v4174_v63 }
0x22af   :  { %v4257_v49 = vmax.f32 %v4253_v43, 0.0 }
0x22b0   :  { %v4256_v47 = vmax.f32 %v4248_v8, 0.0 }
0x22b2   :  { %4991 = vmatprep.mubr.msk.f32.mxu0 %vm2131_vm7, %v4256_v47 }
0x22b3   :  { %4992 = vmatmul.mubr.msk.f32.vlgmr.msra.gmra.mrb[38].mxu0 %vm2131_vm7, %v4257_v49 }
0x2386   :  { %v4993_v58 = vpop.f32.mrb[38].mxu0 }
0x2387   :  { %v4340_v59 = vadd.f32 %v4993_v58, %v6123_v55  ;;  %v4330_v50 = vpop.f32.mrb[39].mxu0 }
0x2388   :  { %v4339_v53 = vadd.f32 %v4330_v50, %v6125_v56 }
0x2389   :  { %v4346_v17 = vadd.f32 %v4344_v26, %v4340_v59 }
0x238a   :  { %v4345_v51 = vadd.f32 %v4344_v26, %v4339_v53 }
0x238b   :  { %v4351_v54 = vsel %vm101_vm0, %v4346_v17, 0.0 }
0x238c   :  { %4352 = vadd.xlane.f32.xlu1 %v4351_v54  ;;  %v4348_v57 = vsel %vm101_vm0, %v4345_v51, 0.0 }
0x238d   :  { %4349 = vadd.xlane.f32.xlu0 %v4348_v57 }
0x2419   :  { %v4353_v60 = vpop.xlane.xlu1 %4352 }
0x241a   :  { %v4355_v1 = vmul.f32 0.03125, %v4353_v60  ;;  %v4350_v42 = vpop.xlane.xlu0 %4349 }
0x241b   :  { %v4354_v11 = vmul.f32 0.03125, %v4350_v42 }
0x241c   :  { %v4357_v18 = vsub.f32 %v4346_v17, %v4355_v1 }
0x241d   :  { %v4356_v22 = vsub.f32 %v4345_v51, %v4354_v11 }
0x241e   :  { %v4359_v38 = vmul.f32 %v4357_v18, %v4357_v18 }
0x241f   :  { %v4358_v16 = vmul.f32 %v4356_v22, %v4356_v22 }
0x2420   :  { %v4363_v55 = vsel %vm101_vm0, %v4359_v38, 0.0 }
0x2421   :  { %4364 = vadd.xlane.f32.xlu1 %v4363_v55  ;;  %v4360_v56 = vsel %vm101_vm0, %v4358_v16, 0.0 }
0x2422   :  { %4361 = vadd.xlane.f32.xlu0 %v4360_v56 }
0x24ae   :  { %v4365_v61 = vpop.xlane.xlu1 %4364 }
0x24af   :  { %v4367_v15 = vmul.f32 0.03125, %v4365_v61  ;;  %v4362_v46 = vpop.xlane.xlu0 %4361 }
0x24b0   :  { %v4366_v5 = vmul.f32 0.03125, %v4362_v46 }
0x24b1   :  { %v4369_v44 = vadd.f32 1e-05, %v4367_v15 }
0x24b2   :  { %v4368_v19 = vadd.f32 1e-05, %v4366_v5 }
0x24b3   :  { %5285 = vrsqrt.f32 %v4369_v44 }
0x24b4   :  { %5287 = vrsqrt.f32 %v4368_v19 }
0x24bd   :  { %v5286_v4 = vpop.eup %5285 }
0x24be   :  { %v5288_v7 = vpop.eup %5287  ;;  %v4373_v9 = vmul.f32 %v5286_v4, %v4357_v18 }
0x24bf   :  { %v4372_v20 = vmul.f32 %v5288_v7, %v4356_v22 }
0x24c0   :  { %v4379_v48 = vmul.f32 %v4377_v6, %v4373_v9 }
0x24c1   :  { %v4378_v13 = vmul.f32 %v4377_v6, %v4372_v20 }
0x24c2   :  { %v4385_v23 = vadd.f32 %v4383_v10, %v4379_v48 }
0x24c3   :  { %v4384_v21 = vadd.f32 %v4383_v10, %v4378_v13 }
0x24c4   :  { %4387 = vst.msk [vmem:[#allocation7 + $0x8] sm:$0xff] %vm101_vm0, %v4385_v23 }
0x24c5   :  { %4386 = vst.msk [vmem:[#allocation7] sm:$0xff] %vm101_vm0, %v4384_v21 }
0x24c6   :  { %5345 = shalt.err (!%p5342_p6)
}
0x24c7   :  { %s5346_s11 = scalar_lea.hbm %s6222_s9, 256 }
0x24c8   :  { %p5347_p7 = scmp.ne.s32.totalorder %s6222_s9, %s5346_s11  ;;  %p5350_p8 = scmp.lt.u32.totalorder %s5346_s11, %s6222_s9 }
0x24ca   :  { %p5352_p9 = pnand %p5350_p8, %p5347_p7 }
0x24cc   :  { %5355 = shalt.err (!%p5352_p9)
}
0x24cd   :  { %4399 = dma.vmem_to_hbm [thread:$0]  %s4394_s5, 256, %s6222_s9, [#allocation4], %s5363_s19, %s5363_s19, %s5364_s20  }
0x24ce   :  { %5360 = dma.done.wait [#allocation4], 256  }
0x24cf   :  { %5361 = vsyncadd [#allocation4], 4294967040 }
0x24d0   :  { %4403 = vsyncpa [#allocation3], 1 }
0x24d1   :  { %4404 = vsyncpa [#allocation6], 1 }
0x24d2   :  { %4405 = vsyncpa [#allocation4], 1 }

</bundles_post_ra>
